<compile_context>
chip_gen: v7x
topology: tpu7x:2x2x1
jax: 0.10.0
libtpu: 0.0.40
codegen_flags: <defaults>
</compile_context>

<pallas_src>
import functools

import jax
import jax.numpy as jnp
from jax.experimental import pallas as pl
from jax.experimental.pallas import tpu as pltpu


# --------------------------------------------------------------------------
# Kernel
# --------------------------------------------------------------------------
def _cat_embedding_kernel(xp_ref, ws_ref, bs_ref, we_ref, be_ref, out_ref):
    # xp_ref : (TB*Np, Dp_pad) bf16  -- TB images' flattened patches (zero-padded K)
    # ws_ref : (Dp_pad, F)     bf16  -- surrogate backbone patch-embed weights
    # bs_ref : (1, F)          f32   -- surrogate backbone bias
    # we_ref : (F, E)          bf16  -- embedding_layer.weight^T, pre-scaled by 1/Np
    # be_ref : (1, E)          f32   -- embedding_layer.bias
    # out_ref: (TB, E)         f32   -- L2-normalized embeddings (lane-dense block)
    TB = out_ref.shape[0]
    Np = xp_ref.shape[0] // TB

    # --- backbone surrogate: patch-embed matmul (bf16 in, f32 acc) + ReLU ---
    h = jnp.dot(xp_ref[...], ws_ref[...],
                preferred_element_type=jnp.float32)            # (TB*Np, F) f32
    h = jnp.maximum(h + bs_ref[...], 0.0)

    # Global average pool over patches; the 1/Np scale is folded into we_ref.
    # TODO(synk): if the bundle dump shows a VMEM copy for this reshape, switch
    # to a block-diagonal ones (TB, TB*Np) matmul on the (idle) MXU.
    feat = jnp.sum(h.reshape(TB, Np, -1), axis=1)              # (TB, F) f32

    # --- embedding_layer: Linear(in_features, embedding_size), batched ---
    emb = jnp.dot(feat.astype(we_ref.dtype), we_ref[...],
                  preferred_element_type=jnp.float32) + be_ref[...]   # (TB, E)

    # --- F.normalize(p=2, dim=1): x / max(||x||_2, 1e-12) ---
    sumsq = jnp.sum(emb * emb, axis=1, keepdims=True)
    emb = emb * jax.lax.rsqrt(jnp.maximum(sumsq, 1e-24))

    out_ref[...] = emb.astype(out_ref.dtype)


# --------------------------------------------------------------------------
# One-time parameter preparation (cached at "model init", not per call)
# --------------------------------------------------------------------------
def prepare_cat_embedding_params(w_stem, b_stem, w_emb, b_emb, *,
                                 patch, image_hw, channels=3):
    """Cast/scale/pad the weights once; the forward pass reuses these arrays."""
    H, W = image_hw
    P = patch
    assert H % P == 0 and W % P == 0
    Np = (H // P) * (W // P)
    Dp = channels * P * P
    assert w_stem.shape[0] == Dp
    F = w_stem.shape[1]
    E = w_emb.shape[1]

    # Pad K to a full 256-deep MXU pass (v6e/v7x); zero rows/cols keep math exact.
    Dp_pad = -(-Dp // 256) * 256

    arrays = dict(
        w_stem=jnp.pad(w_stem.astype(jnp.bfloat16), ((0, Dp_pad - Dp), (0, 0))),
        b_stem=b_stem.reshape(1, F).astype(jnp.float32),
        w_emb=(w_emb / Np).astype(jnp.bfloat16),   # 1/Np mean-pool scale folded in
        b_emb=b_emb.reshape(1, E).astype(jnp.float32),
    )
    meta = dict(patch=P, channels=channels, np=Np, dp=Dp, dp_pad=Dp_pad, f=F, e=E)
    return arrays, meta


# --------------------------------------------------------------------------
# Generation-aware tiling
# --------------------------------------------------------------------------
def _hw_config():
    """target_rows / per-step VMEM budget / dual-TensorCore flag per generation."""
    kind = ""
    try:
        kind = jax.devices()[0].device_kind.lower()
    except Exception:
        pass
    if ("v5 lite" in kind) or ("v5e" in kind) or ("v5lite" in kind):
        # 128-high MXU, 16 MiB default scoped VMEM, single TC.
        return dict(target_rows=256, vmem_budget=12 * 2**20, multi_core=False)
    if "v6" in kind:
        # Single TC, 32 MiB default scoped VMEM: prefer the largest tile that fits.
        return dict(target_rows=512, vmem_budget=24 * 2**20, multi_core=False)
    if ("v7" in kind) or ("v4" in kind):
        # Two TensorCores share the chip; keep per-step footprint modest.
        return dict(target_rows=256, vmem_budget=20 * 2**20, multi_core=True)
    return dict(target_rows=256, vmem_budget=12 * 2**20, multi_core=False)


def _step_footprint_bytes(tb, Np, Dp_pad, F, E):
    rows = tb * Np
    xp = rows * Dp_pad * 2 * 2          # bf16 input, double-buffered
    w = (Dp_pad * F + F * E) * 2        # bf16 weights, single-buffered
    bias = (F + E) * 4
    h = rows * F * 4                    # f32 stem activation temp
    small = tb * (F + 2 * E) * 4        # feat + emb + headroom
    out = tb * E * 4 * 2                # f32 output, double-buffered
    return xp + w + bias + h + small + out


def _select_batch_tile(B, Np, Dp_pad, F, E, target_rows, vmem_budget, multi_core):
    TB = max(1, min(B, target_rows // Np))
    if TB < B:
        TB = max(8, (TB // 8) * 8)      # keep sublane-dense blocks (TB % 8 == 0)
        # VMEM-budget clamp: never let rounding blow the stem tile past the budget.
        while TB > 8 and _step_footprint_bytes(TB, Np, Dp_pad, F, E) > vmem_budget:
            TB -= 8
    # Dual-TC chips: prefer >= 2 tiles so both TensorCores get work.
    if multi_core and TB == B and B >= 16 and B % 16 == 0:
        half = B // 2
        if _step_footprint_bytes(half, Np, Dp_pad, F, E) <= vmem_budget:
            TB = half
    return TB, _step_footprint_bytes(TB, Np, Dp_pad, F, E)


# --------------------------------------------------------------------------
# Forward pass
# --------------------------------------------------------------------------
@functools.partial(jax.jit,
                   static_argnames=("patch", "dp", "dp_pad", "np_", "tb",
                                    "vmem_limit"))
def _forward_impl(x, w_stem, b_stem, w_emb, b_emb, *,
                  patch, dp, dp_pad, np_, tb, vmem_limit):
    B, C, H, W = x.shape
    P = patch
    F = w_stem.shape[1]
    E = w_emb.shape[1]
    B_pad = -(-B // tb) * tb
    n_tiles = B_pad // tb

    # NCHW -> flattened non-overlapping patches, fused (under jit) with the
    # batch/K zero-pad and the f32->bf16 cast into one read-f32/write-bf16 pass.
    xp = x.reshape(B, C, H // P, P, W // P, P)
    xp = jnp.transpose(xp, (0, 2, 4, 1, 3, 5)).reshape(B, np_, dp)
    xp = jnp.pad(xp, ((0, B_pad - B), (0, 0), (0, dp_pad - dp)))
    xp = xp.astype(jnp.bfloat16).reshape(B_pad * np_, dp_pad)

    const = pl.Buffered(1)   # weights are revisited every step: single-buffer them

    out = pl.pallas_call(
        _cat_embedding_kernel,
        out_shape=jax.ShapeDtypeStruct((B_pad, E), jnp.float32),
        grid_spec=pltpu.PrefetchScalarGridSpec(
            num_scalar_prefetch=0,
            grid=(n_tiles,),
            in_specs=[
                pl.BlockSpec((tb * np_, dp_pad), lambda b: (b, 0)),
                pl.BlockSpec((dp_pad, F), lambda b: (0, 0), pipeline_mode=const),
                pl.BlockSpec((1, F), lambda b: (0, 0), pipeline_mode=const),
                pl.BlockSpec((F, E), lambda b: (0, 0), pipeline_mode=const),
                pl.BlockSpec((1, E), lambda b: (0, 0), pipeline_mode=const),
            ],
            out_specs=pl.BlockSpec((tb, E), lambda b: (b, 0)),
        ),
        compiler_params=pltpu.CompilerParams(
            dimension_semantics=("parallel",),
            vmem_limit_bytes=vmem_limit),
    )(xp, w_stem, b_stem, w_emb, b_emb)

    return out[:B]


def cat_embedding_forward(x, params, meta, *, target_rows=None):
    """x: [B, C, H, W] float32 (NCHW). Returns [B, E] float32 L2-normalized."""
    hw = _hw_config()
    tr = hw["target_rows"] if target_rows is None else target_rows
    B = x.shape[0]
    TB, footprint = _select_batch_tile(
        B, meta["np"], meta["dp_pad"], meta["f"], meta["e"],
        tr, hw["vmem_budget"], hw["multi_core"])

    # Raise the scoped-VMEM limit only if the per-step footprint needs it
    # (16 MiB is the most conservative default across generations).
    default_scoped = 16 * 2**20
    vmem_limit = int(footprint * 1.25) if footprint > default_scoped else None

    return _forward_impl(
        x, params["w_stem"], params["b_stem"], params["w_emb"], params["b_emb"],
        patch=meta["patch"], dp=meta["dp"], dp_pad=meta["dp_pad"],
        np_=meta["np"], tb=TB, vmem_limit=vmem_limit)


# --------------------------------------------------------------------------
# References
# --------------------------------------------------------------------------
def _reference_bf16(x, w_stem, b_stem, w_emb, b_emb, patch=8):
    """Mirrors the kernel's exact data path (bf16 inputs, f32 accumulation)."""
    B, C, H, W = x.shape
    P = patch
    Np = (H // P) * (W // P)
    Dp = C * P * P
    xp = x.reshape(B, C, H // P, P, W // P, P)
    xp = jnp.transpose(xp, (0, 2, 4, 1, 3, 5)).reshape(B, Np, Dp)
    xp = xp.astype(jnp.bfloat16)
    ws = w_stem.astype(jnp.bfloat16)
    we = (w_emb / Np).astype(jnp.bfloat16)
    h = jnp.einsum("bnd,df->bnf", xp, ws, preferred_element_type=jnp.float32)
    h = jnp.maximum(h + b_stem, 0.0)
    feat = jnp.sum(h, axis=1).astype(jnp.bfloat16)
    emb = jnp.einsum("bf,fe->be", feat, we,
                     preferred_element_type=jnp.float32) + b_emb
    sumsq = jnp.sum(emb * emb, axis=1, keepdims=True)
    return emb * jax.lax.rsqrt(jnp.maximum(sumsq, 1e-24))


def _reference_f32(x, w_stem, b_stem, w_emb, b_emb, patch=8):
    """Full-precision math reference (mean pool, sqrt/divide normalize)."""
    B, C, H, W = x.shape
    P = patch
    Np = (H // P) * (W // P)
    Dp = C * P * P
    xp = x.reshape(B, C, H // P, P, W // P, P)
    xp = jnp.transpose(xp, (0, 2, 4, 1, 3, 5)).reshape(B, Np, Dp)
    h = jnp.maximum(jnp.einsum("bnd,df->bnf", xp, w_stem) + b_stem, 0.0)
    feat = jnp.mean(h, axis=1)
    emb = feat @ w_emb + b_emb
    norm = jnp.sqrt(jnp.sum(emb * emb, axis=1, keepdims=True))
    return emb / jnp.maximum(norm, 1e-12)


# --------------------------------------------------------------------------
# Example / self-test
# --------------------------------------------------------------------------
if __name__ == "__main__":
    # Small, deterministic example consistent with the module's forward:
    # image batch [B, 3, 32, 32] -> features [B, 1408] -> embeddings [B, 512].
    B, C, H, W = 2, 3, 32, 32
    PATCH = 8
    IN_FEATURES = 1408        # efficientnet_b2 num_features
    EMB_SIZE = 512            # default embedding_size

    Dp = C * PATCH * PATCH
    key = jax.random.PRNGKey(0)
    kx, ks, kbs, ke, kbe = jax.random.split(key, 5)

    x = jax.random.normal(kx, (B, C, H, W), dtype=jnp.float32)

    # Deterministic parameter init (PyTorch-Linear-style uniform bounds).
    s_bound = 1.0 / (Dp ** 0.5)
    e_bound = 1.0 / (IN_FEATURES ** 0.5)
    w_stem = jax.random.uniform(ks, (Dp, IN_FEATURES), jnp.float32,
                                -s_bound, s_bound)
    b_stem = jax.random.uniform(kbs, (IN_FEATURES,), jnp.float32,
                                -s_bound, s_bound)
    w_emb = jax.random.uniform(ke, (IN_FEATURES, EMB_SIZE), jnp.float32,
                               -e_bound, e_bound)
    b_emb = jax.random.uniform(kbe, (EMB_SIZE,), jnp.float32,
                               -e_bound, e_bound)

    # One-time weight prep (cached across calls; not part of the per-call path).
    params, meta = prepare_cat_embedding_params(
        w_stem, b_stem, w_emb, b_emb, patch=PATCH, image_hw=(H, W), channels=C)

    out = cat_embedding_forward(x, params, meta)
    out = jax.block_until_ready(out)
    assert out.shape == (B, EMB_SIZE)

    # Tight check against a reference that mirrors the kernel's bf16 data path.
    ref_bf = _reference_bf16(x, w_stem, b_stem, w_emb, b_emb, patch=PATCH)
    assert jnp.allclose(out, ref_bf, atol=1e-3, rtol=1e-3), \
        "mismatch vs bf16-path reference"

    # Looser semantic check against the full-f32 math (bf16 quantization noise).
    ref_f32 = _reference_f32(x, w_stem, b_stem, w_emb, b_emb, patch=PATCH)
    assert jnp.allclose(out, ref_f32, atol=2e-2, rtol=2e-2), \
        "mismatch vs f32 math reference"

    print("KERNEL_OK")
</pallas_src>

<mosaic_0001>
module attributes {stable_mosaic.version = 11 : i64} {
  func.func @_cat_embedding_kernel(%arg0: i32, %arg1: memref<32x256xbf16, #tpu.memory_space<vmem>>, %arg2: memref<256x1408xbf16, #tpu.memory_space<vmem>>, %arg3: memref<1x1408xf32, #tpu.memory_space<vmem>>, %arg4: memref<1408x512xbf16, #tpu.memory_space<vmem>>, %arg5: memref<1x512xf32, #tpu.memory_space<vmem>>, %arg6: memref<2x512xf32, #tpu.memory_space<vmem>>) attributes {dimension_semantics = [#tpu.dimension_semantics<parallel>], iteration_bounds = array<i64: 1>, scalar_prefetch = 0 : i64, scratch_operands = 0 : i64, tpu.core_type = #tpu.core_type<tc>, window_params = [{transform_indices = @transform_0, window_bounds = array<i64: 32, 256>}, {pipeline_mode = #tpu.pipeline_mode<synchronous>, transform_indices = @transform_1, window_bounds = array<i64: 256, 1408>}, {pipeline_mode = #tpu.pipeline_mode<synchronous>, transform_indices = @transform_2, window_bounds = array<i64: 1, 1408>}, {pipeline_mode = #tpu.pipeline_mode<synchronous>, transform_indices = @transform_3, window_bounds = array<i64: 1408, 512>}, {pipeline_mode = #tpu.pipeline_mode<synchronous>, transform_indices = @transform_4, window_bounds = array<i64: 1, 512>}, {transform_indices = @transform_5, window_bounds = array<i64: 2, 512>}]} {
    %c0 = arith.constant 0 : index
    %c0_0 = arith.constant 0 : index
    %0 = vector.load %arg1[%c0, %c0_0] : memref<32x256xbf16, #tpu.memory_space<vmem>>, vector<32x256xbf16>
    %c0_1 = arith.constant 0 : index
    %c0_2 = arith.constant 0 : index
    %1 = vector.load %arg2[%c0_1, %c0_2] : memref<256x1408xbf16, #tpu.memory_space<vmem>>, vector<256x1408xbf16>
    %cst = arith.constant dense<0.000000e+00> : vector<32x1408xf32>
    %2 = tpu.matmul %0, %1, %cst {dimension_numbers = #tpu.dot_dimension_numbers<[1], [0], [0], [1], [0, 0, 1, 1], [], []>} : vector<32x256xbf16>, vector<256x1408xbf16>, vector<32x1408xf32> -> vector<32x1408xf32>
    %c0_3 = arith.constant 0 : index
    %c0_4 = arith.constant 0 : index
    %3 = vector.load %arg3[%c0_3, %c0_4] : memref<1x1408xf32, #tpu.memory_space<vmem>>, vector<1x1408xf32>
    %4 = vector.broadcast %3 : vector<1x1408xf32> to vector<32x1408xf32>
    %5 = arith.addf %2, %4 : vector<32x1408xf32>
    %cst_5 = arith.constant 0.000000e+00 : f32
    %6 = vector.broadcast %cst_5 : f32 to vector<32x1408xf32>
    %7 = arith.maximumf %5, %6 : vector<32x1408xf32>
    %8 = vector.shape_cast %7 : vector<32x1408xf32> to vector<2x16x1408xf32>
    %cst_6 = arith.constant dense<0.000000e+00> : vector<2x1408xf32>
    %9 = vector.multi_reduction <add>, %8, %cst_6 [1] : vector<2x16x1408xf32> to vector<2x1408xf32>
    %10 = arith.truncf %9 : vector<2x1408xf32> to vector<2x1408xbf16>
    %c0_7 = arith.constant 0 : index
    %c0_8 = arith.constant 0 : index
    %11 = vector.load %arg4[%c0_7, %c0_8] : memref<1408x512xbf16, #tpu.memory_space<vmem>>, vector<1408x512xbf16>
    %cst_9 = arith.constant dense<0.000000e+00> : vector<2x512xf32>
    %12 = tpu.matmul %10, %11, %cst_9 {dimension_numbers = #tpu.dot_dimension_numbers<[1], [0], [0], [1], [0, 0, 1, 1], [], []>} : vector<2x1408xbf16>, vector<1408x512xbf16>, vector<2x512xf32> -> vector<2x512xf32>
    %c0_10 = arith.constant 0 : index
    %c0_11 = arith.constant 0 : index
    %13 = vector.load %arg5[%c0_10, %c0_11] : memref<1x512xf32, #tpu.memory_space<vmem>>, vector<1x512xf32>
    %14 = vector.broadcast %13 : vector<1x512xf32> to vector<2x512xf32>
    %15 = arith.addf %12, %14 : vector<2x512xf32>
    %16 = arith.mulf %15, %15 : vector<2x512xf32>
    %cst_12 = arith.constant dense<0.000000e+00> : vector<2xf32>
    %17 = vector.multi_reduction <add>, %16, %cst_12 [1] : vector<2x512xf32> to vector<2xf32>
    %18 = vector.shape_cast %17 : vector<2xf32> to vector<2x1xf32>
    %cst_13 = arith.constant 1.000000e-24 : f32
    %19 = vector.broadcast %cst_13 : f32 to vector<2x1xf32>
    %20 = arith.maximumf %18, %19 : vector<2x1xf32>
    %21 = math.rsqrt %20 : vector<2x1xf32>
    %22 = vector.broadcast %21 : vector<2x1xf32> to vector<2x512xf32>
    %23 = arith.mulf %15, %22 : vector<2x512xf32>
    %c0_14 = arith.constant 0 : index
    %c0_15 = arith.constant 0 : index
    %24 = vector.load %arg6[%c0_14, %c0_15] : memref<2x512xf32, #tpu.memory_space<vmem>>, vector<2x512xf32>
    tpu.vector_store %arg6[%c0_14, %c0_15], %23 {strides = array<i32>} : memref<2x512xf32, #tpu.memory_space<vmem>>, vector<2x512xf32>,
    return
  }
  func.func @transform_0(%arg0: i32) -> (i32, i32) {
    %c0_i32 = arith.constant 0 : i32
    %c0_i32_0 = arith.constant 0 : i32
    return %arg0, %c0_i32 : i32, i32
  }
  func.func @transform_1(%arg0: i32) -> (i32, i32) {
    %c0_i32 = arith.constant 0 : i32
    %c0_i32_0 = arith.constant 0 : i32
    %c0_i32_1 = arith.constant 0 : i32
    return %c0_i32, %c0_i32_0 : i32, i32
  }
  func.func @transform_2(%arg0: i32) -> (i32, i32) {
    %c0_i32 = arith.constant 0 : i32
    %c0_i32_0 = arith.constant 0 : i32
    %c0_i32_1 = arith.constant 0 : i32
    return %c0_i32, %c0_i32_0 : i32, i32
  }
  func.func @transform_3(%arg0: i32) -> (i32, i32) {
    %c0_i32 = arith.constant 0 : i32
    %c0_i32_0 = arith.constant 0 : i32
    %c0_i32_1 = arith.constant 0 : i32
    return %c0_i32, %c0_i32_0 : i32, i32
  }
  func.func @transform_4(%arg0: i32) -> (i32, i32) {
    %c0_i32 = arith.constant 0 : i32
    %c0_i32_0 = arith.constant 0 : i32
    %c0_i32_1 = arith.constant 0 : i32
    return %c0_i32, %c0_i32_0 : i32, i32
  }
  func.func @transform_5(%arg0: i32) -> (i32, i32) {
    %c0_i32 = arith.constant 0 : i32
    %c0_i32_0 = arith.constant 0 : i32
    return %arg0, %c0_i32 : i32, i32
  }
}

</mosaic_0001>

<bundles_post_ra>
// kernel: _forward_impl.1
= control target key start
LH: loop header
LB: loop body
LE: loop exit
PB: predicated region body
PF: predicated region fallthrough
CT: control target
= control target key end

     0   :  { %10 = vsyncpa [#allocation3], 0  ;;  %s6799_s0 = inlined_call_operand.vmem [shape: bf16[32,256], index: 0, kind: input, shape index: {}]   ;;  %s6800_s1 = inlined_call_operand.vmem [shape: bf16[256,1408], index: 1, kind: input, shape index: {}]   ;;  %s6801_s2 = inlined_call_operand.hbm [shape: f32[1,1408], index: 2, kind: input, shape index: {}]   ;;  %s6802_s3 = inlined_call_operand.hbm [shape: bf16[1408,512], index: 3, kind: input, shape index: {}]   ;;  %s6803_s4 = inlined_call_operand.hbm [shape: f32[1,512], index: 4, kind: input, shape index: {}]   ;;  %s6804_s5 = inlined_call_operand.hbm [shape: f32[2,512], index: 5, kind: output, shape index: {}]  }
   0x1   :  { %11 = vsyncpa [#allocation6], 0 }
   0x2   :  { %12 = vsyncpa [#allocation4], 0  ;;  %s6028_s18 = smov [#allocation5]   ;;  %s5934_s22 = scalar_lea.hbm %s6802_s3, 45056 }
   0x3   :  { %s32_s19 = sshll.u32 %s6028_s18, 4  ;;  %p5935_p0 = scmp.ne.s32.totalorder %s6802_s3, %s5934_s22  ;;  %s33_s19 = int_to_ptr.vmem [resolvable:$true] %s32_s19 }
   0x4   :  { %p5938_p1 = scmp.lt.u32.totalorder %s5934_s22, %s6802_s3 }
   0x6   :  { %p5940_p2 = pnand %p5938_p1, %p5935_p0 }
   0x8   :  { %5943 = shalt.err (!%p5940_p2)
}
   0x9   :  { %s5944_s27 = scalar_lea.vmem %s33_s19, 45056  ;;  %p5949_p4 = scmp.lt.s32.totalorder %s33_s19, %s33_s19 }
   0xa   :  { %p5945_p3 = scmp.ne.s32.totalorder %s33_s19, %s5944_s27  ;;  %p5950_p5 = scmp.lt.s32.totalorder %s5944_s27, %s5944_s27 }
   0xc   :  { %p5951_p6 = por %p5950_p5, %p5949_p4 }
   0xe   :  { %p5952_p7 = pnand %p5951_p6, %p5945_p3 }
  0x10   :  { %5955 = shalt.err (!%p5952_p7)
}
  0x11   :  { %s6029_s28 = smov 256   ;;  %s6030_s29 = smov 16  }
  0x12   :  { %38 = dma.hbm_to_vmem [thread:$0]  %s6802_s3, 45056, %s33_s19, [#allocation6], %s6029_s28, %s6029_s28, %s6030_s29  }
  0x13   :  { %s6031_s7 = smov [#allocation2]   ;;  %s6032_s9 = smov [#allocation7]  }
  0x14   :  { %s23_s8 = sshll.u32 %s6031_s7, 4  ;;  %s45_s10 = sshll.u32 %s6032_s9, 4  ;;  %s24_s8 = int_to_ptr.vmem [resolvable:$true] %s23_s8  ;;  %s46_s10 = int_to_ptr.vmem [resolvable:$true] %s45_s10 }
  0x15   :  { %s5956_s13 = scalar_lea.hbm %s6801_s2, 176 }
  0x16   :  { %p5957_p8 = scmp.ne.s32.totalorder %s6801_s2, %s5956_s13  ;;  %p5960_p9 = scmp.lt.u32.totalorder %s5956_s13, %s6801_s2 }
  0x18   :  { %p5962_p10 = pnand %p5960_p9, %p5957_p8 }
  0x1a   :  { %5965 = shalt.err (!%p5962_p10)
}
  0x1b   :  { %s5966_s3 = scalar_lea.vmem %s24_s8, 176  ;;  %s5970_s18 = scalar_lea.vmem %s24_s8, 192 }
  0x1c   :  { %p5967_p11 = scmp.ne.s32.totalorder %s24_s8, %s5966_s3  ;;  %p5971_p12 = scmp.lt.s32.totalorder %s24_s8, %s24_s8 }
  0x1d   :  { %p5972_p13 = scmp.lt.s32.totalorder %s5970_s18, %s5966_s3 }
  0x1f   :  { %p5973_p0 = por %p5972_p13, %p5971_p12 }
  0x21   :  { %p5974_p1 = pnand %p5973_p0, %p5967_p11 }
  0x23   :  { %5977 = shalt.err (!%p5974_p1)
}
  0x24   :  { %26 = dma.hbm_to_vmem [thread:$0]  %s6801_s2, 176, %s24_s8, [#allocation3]  }
  0x25   :  { %s5978_s23 = scalar_lea.hbm %s6803_s4, 64 }
  0x26   :  { %p5979_p2 = scmp.ne.s32.totalorder %s6803_s4, %s5978_s23  ;;  %p5982_p3 = scmp.lt.u32.totalorder %s5978_s23, %s6803_s4 }
  0x28   :  { %p5984_p4 = pnand %p5982_p3, %p5979_p2 }
  0x2a   :  { %5987 = shalt.err (!%p5984_p4)
}
  0x2b   :  { %s5988_s28 = scalar_lea.vmem %s46_s10, 64  ;;  %p5993_p6 = scmp.lt.s32.totalorder %s46_s10, %s46_s10 }
  0x2c   :  { %p5989_p5 = scmp.ne.s32.totalorder %s46_s10, %s5988_s28  ;;  %p5994_p7 = scmp.lt.s32.totalorder %s5988_s28, %s5988_s28 }
  0x2e   :  { %p5995_p8 = por %p5994_p7, %p5993_p6 }
  0x30   :  { %p5996_p9 = pnand %p5995_p8, %p5989_p5 }
  0x32   :  { %5999 = shalt.err (!%p5996_p9)
}
  0x33   :  { %48 = dma.hbm_to_vmem [thread:$0]  %s6803_s4, 64, %s46_s10, [#allocation6]  }
  0x34   :  { %6022 = dma.done.wait [#allocation3], 176  }
  0x35   :  { %6023 = vsyncadd [#allocation3], 4294967120 }
  0x36   :  { %6024 = dma.done.wait [#allocation6], 45120  }
  0x37   :  { %6025 = vsyncadd [#allocation6], 4294922176  ;;  %v5139_v0 = vld [vmem:[%s6800_s1 + $0x4] ss:$44 sps:$4 sm:$0xff]   ;;  %v5141_v1 = vld [vmem:[%s6800_s1] ss:$44 sps:$4 sm:$0xff]  }
  0x38   :  { %1230 = vmatprep.subr.bf16.mxu0 %v5139_v0  ;;  %v5142_v2 = vld [vmem:[%s6800_s1 + $0x5c] ss:$44 sps:$4 sm:$0xff]   ;;  %v5144_v3 = vld [vmem:[%s6800_s1 + $0x58] ss:$44 sps:$4 sm:$0xff]   ;;  %v5145_v4 = vld [vmem:[%s6800_s1 + $0xb4] ss:$44 sps:$4 sm:$0xff]  }
  0x39   :  { %1231 = vmatpush1.bf16.msra.mxu0 %v5141_v1  ;;  %v5147_v5 = vld [vmem:[%s6800_s1 + $0xb0] ss:$44 sps:$4 sm:$0xff]   ;;  %v5148_v6 = vld [vmem:[%s6800_s1 + $0x10c] ss:$44 sps:$4 sm:$0xff]   ;;  %v5150_v7 = vld [vmem:[%s6800_s1 + $0x108] ss:$44 sps:$4 sm:$0xff]  }
  0x3a   :  { %1232 = vmatprep.subr.bf16.mxu0 %v5142_v2  ;;  %v5151_v8 = vld [vmem:[%s6800_s1 + $0x164] ss:$44 sps:$4 sm:$0xff]   ;;  %v5153_v9 = vld [vmem:[%s6800_s1 + $0x160] ss:$44 sps:$4 sm:$0xff]   ;;  %v5154_v10 = vld [vmem:[%s6800_s1 + $0x1bc] ss:$44 sps:$4 sm:$0xff]  }
  0x3b   :  { %v5175_v11 = vld [vmem:[%s6800_s1 + $0xc] ss:$44 sps:$4 sm:$0xff]   ;;  %v5179_v13 = vld [vmem:[%s6800_s1 + $0x8] ss:$44 sps:$4 sm:$0xff]   ;;  %v5181_v14 = vld [vmem:[%s6800_s1 + $0x64] ss:$44 sps:$4 sm:$0xff]  }
  0x3c   :  { %v5156_v12 = vld [vmem:[%s6800_s1 + $0x1b8] ss:$44 sps:$4 sm:$0xff]   ;;  %1283 = vmatprep.subr.bf16.mxu1 %v5175_v11  ;;  %v5157_v15 = vld [vmem:[%s6800_s1 + $0x214] ss:$44 sps:$4 sm:$0xff]   ;;  %v5187_v17 = vld [vmem:[%s6800_s1 + $0xbc] ss:$44 sps:$4 sm:$0xff]  }
  0x3d   :  { %1233 = vmatpush1.bf16.msra.mxu0 %v5144_v3  ;;  %1284 = vmatpush1.bf16.msra.mxu1 %v5179_v13  ;;  %v5185_v16 = vld [vmem:[%s6800_s1 + $0x60] ss:$44 sps:$4 sm:$0xff]   ;;  %v5159_v18 = vld [vmem:[%s6800_s1 + $0x210] ss:$44 sps:$4 sm:$0xff]   ;;  %v5191_v20 = vld [vmem:[%s6800_s1 + $0xb8] ss:$44 sps:$4 sm:$0xff]  }
  0x3e   :  { %1234 = vmatprep.subr.bf16.mxu0 %v5145_v4  ;;  %1285 = vmatprep.subr.bf16.mxu1 %v5181_v14  ;;  %v5160_v19 = vld [vmem:[%s6800_s1 + $0x26c] ss:$44 sps:$4 sm:$0xff]   ;;  %v5193_v21 = vld [vmem:[%s6800_s1 + $0x114] ss:$44 sps:$4 sm:$0xff]   ;;  %v5163_v24 = vld [vmem:[%s6800_s1 + $0x2c4] ss:$44 sps:$4 sm:$0xff]  }
  0x3f   :  { %v5162_v22 = vld [vmem:[%s6800_s1 + $0x268] ss:$44 sps:$4 sm:$0xff]   ;;  %v6174_v23 = vld [vmem:[%s6799_s0 + $0x4] ss:$8 sps:$4 sm:$0xff]   ;;  %v5197_v25 = vld [vmem:[%s6800_s1 + $0x110] ss:$44 sps:$4 sm:$0xff]  }
  0x40   :  { %1262 = vmatprep.mubr.bf16.mxu0 %v6174_v23  ;;  %v5201_v26 = vld [vmem:[%s6800_s1 + $0x16c] ss:$44 sps:$4 sm:$0xff]   ;;  %1315 = vmatprep.mubr.bf16.mxu1 %v6174_v23  ;;  %v5166_v28 = vld [vmem:[%s6800_s1 + $0x31c] ss:$44 sps:$4 sm:$0xff]   ;;  %v5205_v30 = vld [vmem:[%s6800_s1 + $0x1c4] ss:$44 sps:$4 sm:$0xff]  }
  0x41   :  { %1235 = vmatpush1.bf16.msra.mxu0 %v5147_v5  ;;  %1286 = vmatpush1.bf16.msra.mxu1 %v5185_v16  ;;  %v5165_v27 = vld [vmem:[%s6800_s1 + $0x2c0] ss:$44 sps:$4 sm:$0xff]   ;;  %v5204_v29 = vld [vmem:[%s6800_s1 + $0x168] ss:$44 sps:$4 sm:$0xff]   ;;  %v5168_v31 = vld [vmem:[%s6800_s1 + $0x318] ss:$44 sps:$4 sm:$0xff]  }
  0x42   :  { %1236 = vmatprep.subr.bf16.mxu0 %v5148_v6  ;;  %1287 = vmatprep.subr.bf16.mxu1 %v5187_v17  ;;  %v5169_v32 = vld [vmem:[%s6800_s1 + $0x374] ss:$44 sps:$4 sm:$0xff]   ;;  %v5210_v34 = vld [vmem:[%s6800_s1 + $0x21c] ss:$44 sps:$4 sm:$0xff]   ;;  %v5172_v36 = vld [vmem:[%s6800_s1 + $0x3cc] ss:$44 sps:$4 sm:$0xff]  }
  0x43   :  { %v5207_v33 = vld [vmem:[%s6800_s1 + $0x1c0] ss:$44 sps:$4 sm:$0xff]   ;;  %v5171_v35 = vld [vmem:[%s6800_s1 + $0x370] ss:$44 sps:$4 sm:$0xff]   ;;  %v5213_v37 = vld [vmem:[%s6800_s1 + $0x218] ss:$44 sps:$4 sm:$0xff]  }
  0x44   :  { %v5214_v38 = vld [vmem:[%s6800_s1 + $0x274] ss:$44 sps:$4 sm:$0xff]   ;;  %v5177_v40 = vld [vmem:[%s6800_s1 + $0x424] ss:$44 sps:$4 sm:$0xff]   ;;  %v5217_v42 = vld [vmem:[%s6800_s1 + $0x2cc] ss:$44 sps:$4 sm:$0xff]  }
  0x45   :  { %1237 = vmatpush1.bf16.msra.mxu0 %v5150_v7  ;;  %1288 = vmatpush1.bf16.msra.mxu1 %v5191_v20  ;;  %v5174_v39 = vld [vmem:[%s6800_s1 + $0x3c8] ss:$44 sps:$4 sm:$0xff]   ;;  %v5216_v41 = vld [vmem:[%s6800_s1 + $0x270] ss:$44 sps:$4 sm:$0xff]   ;;  %v5180_v43 = vld [vmem:[%s6800_s1 + $0x420] ss:$44 sps:$4 sm:$0xff]  }
  0x46   :  { %1238 = vmatprep.subr.bf16.mxu0 %v5151_v8  ;;  %1289 = vmatprep.subr.bf16.mxu1 %v5193_v21  ;;  %v5183_v44 = vld [vmem:[%s6800_s1 + $0x47c] ss:$44 sps:$4 sm:$0xff]   ;;  %v5220_v46 = vld [vmem:[%s6800_s1 + $0x324] ss:$44 sps:$4 sm:$0xff]   ;;  %v5189_v48 = vld [vmem:[%s6800_s1 + $0x4d4] ss:$44 sps:$4 sm:$0xff]  }
  0x47   :  { %v5219_v45 = vld [vmem:[%s6800_s1 + $0x2c8] ss:$44 sps:$4 sm:$0xff]   ;;  %v5186_v47 = vld [vmem:[%s6800_s1 + $0x478] ss:$44 sps:$4 sm:$0xff]   ;;  %v5222_v49 = vld [vmem:[%s6800_s1 + $0x320] ss:$44 sps:$4 sm:$0xff]  }
  0x48   :  { %v5223_v50 = vld [vmem:[%s6800_s1 + $0x37c] ss:$44 sps:$4 sm:$0xff]   ;;  %v5195_v52 = vld [vmem:[%s6800_s1 + $0x52c] ss:$44 sps:$4 sm:$0xff]   ;;  %v5226_v54 = vld [vmem:[%s6800_s1 + $0x3d4] ss:$44 sps:$4 sm:$0xff]  }
  0x49   :  { %1239 = vmatpush1.bf16.msra.mxu0 %v5153_v9  ;;  %1290 = vmatpush1.bf16.msra.mxu1 %v5197_v25  ;;  %v5192_v51 = vld [vmem:[%s6800_s1 + $0x4d0] ss:$44 sps:$4 sm:$0xff]   ;;  %v5225_v53 = vld [vmem:[%s6800_s1 + $0x378] ss:$44 sps:$4 sm:$0xff]   ;;  %v5198_v55 = vld [vmem:[%s6800_s1 + $0x528] ss:$44 sps:$4 sm:$0xff]  }
  0x4a   :  { %1240 = vmatprep.subr.bf16.mxu0 %v5154_v10  ;;  %1291 = vmatprep.subr.bf16.mxu1 %v5201_v26  ;;  %v5228_v56 = vld [vmem:[%s6800_s1 + $0x3d0] ss:$44 sps:$4 sm:$0xff]   ;;  %v5242_v57 = vld [vmem:[%s6800_s1 + $0x14] ss:$44 sps:$4 sm:$0xff]   ;;  %v5229_v58 = vld [vmem:[%s6800_s1 + $0x42c] ss:$44 sps:$4 sm:$0xff]  }
  0x4b   :  { %v6286_v59 = vld [vmem:[%s6799_s0] ss:$8 sps:$4 sm:$0xff]   ;;  %v6291_v60 = vld [vmem:[%s6799_s0 + $0x14] ss:$8 sps:$4 sm:$0xff]   ;;  %v5246_v63 = vld [vmem:[%s6800_s1 + $0x6c] ss:$44 sps:$4 sm:$0xff]  }
  0x4c   :  { %v5231_v61 = vld [vmem:[%s6800_s1 + $0x428] ss:$44 sps:$4 sm:$0xff]   ;;  %v5240_v62 = vld [vmem:[%s6800_s1 + $0x10] ss:$44 sps:$4 sm:$0xff]   ;;  %v5234_v1 = vld [vmem:[%s6800_s1 + $0x480] ss:$44 sps:$4 sm:$0xff]  }
  0x4d   :  { %1241 = vmatpush1.bf16.msra.mxu0 %v5156_v12  ;;  %1292 = vmatpush1.bf16.msra.mxu1 %v5204_v29  ;;  %v5232_v0 = vld [vmem:[%s6800_s1 + $0x484] ss:$44 sps:$4 sm:$0xff]   ;;  %v5244_v2 = vld [vmem:[%s6800_s1 + $0x68] ss:$44 sps:$4 sm:$0xff]   ;;  %v5247_v7 = vld [vmem:[%s6800_s1 + $0xc0] ss:$44 sps:$4 sm:$0xff]  }
  0x4e   :  { %1242 = vmatprep.subr.bf16.mxu0 %v5157_v15  ;;  %1293 = vmatprep.subr.bf16.mxu1 %v5205_v30  ;;  %v5249_v3 = vld [vmem:[%s6800_s1 + $0xc4] ss:$44 sps:$4 sm:$0xff]   ;;  %v5235_v4 = vld [vmem:[%s6800_s1 + $0x4dc] ss:$44 sps:$4 sm:$0xff]   ;;  %v5238_v9 = vld [vmem:[%s6800_s1 + $0x534] ss:$44 sps:$4 sm:$0xff]  }
  0x4f   :  { %v6322_v5 = vld [vmem:[%s6799_s0 + $0x10] ss:$8 sps:$4 sm:$0xff]   ;;  %v5252_v8 = vld [vmem:[%s6800_s1 + $0x11c] ss:$44 sps:$4 sm:$0xff]   ;;  %v5255_v12 = vld [vmem:[%s6800_s1 + $0x174] ss:$44 sps:$4 sm:$0xff]  }
  0x50   :  { %v5237_v6 = vld [vmem:[%s6800_s1 + $0x4d8] ss:$44 sps:$4 sm:$0xff]   ;;  %v5243_v10 = vld [vmem:[%s6800_s1 + $0x530] ss:$44 sps:$4 sm:$0xff]   ;;  %v5273_v17 = vld [vmem:[%s6800_s1 + $0x74] ss:$44 sps:$4 sm:$0xff]  }
  0x51   :  { %1243 = vmatpush1.bf16.msra.mxu0 %v5159_v18  ;;  %1294 = vmatpush1.bf16.msra.mxu1 %v5207_v33  ;;  %v5250_v11 = vld [vmem:[%s6800_s1 + $0x118] ss:$44 sps:$4 sm:$0xff]   ;;  %v5267_v13 = vld [vmem:[%s6800_s1 + $0x1c] ss:$44 sps:$4 sm:$0xff]   ;;  %v5283_v29 = vld [vmem:[%s6800_s1 + $0x120] ss:$44 sps:$4 sm:$0xff]  }
  0x52   :  { %1244 = vmatprep.subr.bf16.mxu0 %v5160_v19  ;;  %1295 = vmatprep.subr.bf16.mxu1 %v5210_v34  ;;  %v5253_v14 = vld [vmem:[%s6800_s1 + $0x170] ss:$44 sps:$4 sm:$0xff]   ;;  %v5258_v15 = vld [vmem:[%s6800_s1 + $0x1cc] ss:$44 sps:$4 sm:$0xff]   ;;  %v5256_v18 = vld [vmem:[%s6800_s1 + $0x1c8] ss:$44 sps:$4 sm:$0xff]  }
  0x53   :  { %v5265_v16 = vld [vmem:[%s6800_s1 + $0x18] ss:$44 sps:$4 sm:$0xff]   ;;  %v5271_v20 = vld [vmem:[%s6800_s1 + $0x70] ss:$44 sps:$4 sm:$0xff]   ;;  %v5277_v25 = vld [vmem:[%s6800_s1 + $0xc8] ss:$44 sps:$4 sm:$0xff]  }
  0x54   :  { %v5261_v19 = vld [vmem:[%s6800_s1 + $0x224] ss:$44 sps:$4 sm:$0xff]   ;;  %v5279_v21 = vld [vmem:[%s6800_s1 + $0xcc] ss:$44 sps:$4 sm:$0xff]   ;;  %v5291_v30 = vld [vmem:[%s6800_s1 + $0x17c] ss:$44 sps:$4 sm:$0xff]  }
  0x55   :  { %1245 = vmatpush1.bf16.msra.mxu0 %v5162_v22  ;;  %1296 = vmatpush1.bf16.msra.mxu1 %v5213_v37  ;;  %v5259_v22 = vld [vmem:[%s6800_s1 + $0x220] ss:$44 sps:$4 sm:$0xff]   ;;  %v5285_v26 = vld [vmem:[%s6800_s1 + $0x124] ss:$44 sps:$4 sm:$0xff]   ;;  %vm2182_vm0 = vcmask 1041409   ;;  %vm4472_vm1 = vcmask 1041408  }
  0x56   :  { %1246 = vmatprep.subr.bf16.mxu0 %v5163_v24  ;;  %1297 = vmatprep.subr.bf16.mxu1 %v5214_v38  ;;  %v5264_v24 = vld [vmem:[%s6800_s1 + $0x27c] ss:$44 sps:$4 sm:$0xff]   ;;  %v5289_v33 = vld [vmem:[%s6800_s1 + $0x178] ss:$44 sps:$4 sm:$0xff]   ;;  %v5297_v34 = vld [vmem:[%s6800_s1 + $0x1d4] ss:$44 sps:$4 sm:$0xff]  }
  0x57   :  { %v5295_v37 = vld [vmem:[%s6800_s1 + $0x1d0] ss:$44 sps:$4 sm:$0xff]   ;;  %v5303_v38 = vld [vmem:[%s6800_s1 + $0x22c] ss:$44 sps:$4 sm:$0xff]  }
  0x59   :  { %1247 = vmatpush1.bf16.msra.mxu0 %v5165_v27  ;;  %1298 = vmatpush1.bf16.msra.mxu1 %v5216_v41  ;;  %v5262_v27 = vld [vmem:[%s6800_s1 + $0x278] ss:$44 sps:$4 sm:$0xff]   ;;  %v5301_v41 = vld [vmem:[%s6800_s1 + $0x228] ss:$44 sps:$4 sm:$0xff]  }
  0x5a   :  { %1248 = vmatprep.subr.bf16.mxu0 %v5166_v28  ;;  %1299 = vmatprep.subr.bf16.mxu1 %v5217_v42  ;;  %v5270_v28 = vld [vmem:[%s6800_s1 + $0x2d4] ss:$44 sps:$4 sm:$0xff]   ;;  %v5309_v42 = vld [vmem:[%s6800_s1 + $0x284] ss:$44 sps:$4 sm:$0xff]  }
  0x5d   :  { %1249 = vmatpush1.bf16.msra.mxu0 %v5168_v31  ;;  %1300 = vmatpush1.bf16.msra.mxu1 %v5219_v45  ;;  %v5268_v31 = vld [vmem:[%s6800_s1 + $0x2d0] ss:$44 sps:$4 sm:$0xff]   ;;  %v5307_v45 = vld [vmem:[%s6800_s1 + $0x280] ss:$44 sps:$4 sm:$0xff]  }
  0x5e   :  { %1250 = vmatprep.subr.bf16.mxu0 %v5169_v32  ;;  %1301 = vmatprep.subr.bf16.mxu1 %v5220_v46  ;;  %v5276_v32 = vld [vmem:[%s6800_s1 + $0x32c] ss:$44 sps:$4 sm:$0xff]   ;;  %v5315_v46 = vld [vmem:[%s6800_s1 + $0x2dc] ss:$44 sps:$4 sm:$0xff]  }
  0x61   :  { %1251 = vmatpush1.bf16.msra.mxu0 %v5171_v35  ;;  %1302 = vmatpush1.bf16.msra.mxu1 %v5222_v49  ;;  %v5274_v35 = vld [vmem:[%s6800_s1 + $0x328] ss:$44 sps:$4 sm:$0xff]   ;;  %v5313_v49 = vld [vmem:[%s6800_s1 + $0x2d8] ss:$44 sps:$4 sm:$0xff]  }
  0x62   :  { %1252 = vmatprep.subr.bf16.mxu0 %v5172_v36  ;;  %1303 = vmatprep.subr.bf16.mxu1 %v5223_v50  ;;  %v5282_v36 = vld [vmem:[%s6800_s1 + $0x384] ss:$44 sps:$4 sm:$0xff]   ;;  %v5321_v50 = vld [vmem:[%s6800_s1 + $0x334] ss:$44 sps:$4 sm:$0xff]  }
  0x65   :  { %1253 = vmatpush1.bf16.msra.mxu0 %v5174_v39  ;;  %1304 = vmatpush1.bf16.msra.mxu1 %v5225_v53  ;;  %v5280_v39 = vld [vmem:[%s6800_s1 + $0x380] ss:$44 sps:$4 sm:$0xff]   ;;  %v5319_v53 = vld [vmem:[%s6800_s1 + $0x330] ss:$44 sps:$4 sm:$0xff]  }
  0x66   :  { %1254 = vmatprep.subr.bf16.mxu0 %v5177_v40  ;;  %1305 = vmatprep.subr.bf16.mxu1 %v5226_v54  ;;  %v5288_v40 = vld [vmem:[%s6800_s1 + $0x3dc] ss:$44 sps:$4 sm:$0xff]   ;;  %v5327_v54 = vld [vmem:[%s6800_s1 + $0x38c] ss:$44 sps:$4 sm:$0xff]  }
  0x69   :  { %1255 = vmatpush1.bf16.msra.mxu0 %v5180_v43  ;;  %1306 = vmatpush1.bf16.msra.mxu1 %v5228_v56  ;;  %v5286_v43 = vld [vmem:[%s6800_s1 + $0x3d8] ss:$44 sps:$4 sm:$0xff]   ;;  %v5312_v56 = vld [vmem:[%s6800_s1 + $0x53c] ss:$44 sps:$4 sm:$0xff]  }
  0x6a   :  { %1256 = vmatprep.subr.bf16.mxu0 %v5183_v44  ;;  %1307 = vmatprep.subr.bf16.mxu1 %v5229_v58  ;;  %v5294_v44 = vld [vmem:[%s6800_s1 + $0x434] ss:$44 sps:$4 sm:$0xff]   ;;  %v5333_v58 = vld [vmem:[%s6800_s1 + $0x3e4] ss:$44 sps:$4 sm:$0xff]  }
  0x6d   :  { %1257 = vmatpush1.bf16.msra.mxu0 %v5186_v47  ;;  %1308 = vmatpush1.bf16.msra.mxu1 %v5231_v61  ;;  %v5292_v47 = vld [vmem:[%s6800_s1 + $0x430] ss:$44 sps:$4 sm:$0xff]   ;;  %v5310_v61 = vld [vmem:[%s6800_s1 + $0x538] ss:$44 sps:$4 sm:$0xff]  }
  0x6e   :  { %1258 = vmatprep.subr.bf16.mxu0 %v5189_v48  ;;  %1309 = vmatprep.subr.bf16.mxu1 %v5232_v0  ;;  %v5300_v48 = vld [vmem:[%s6800_s1 + $0x48c] ss:$44 sps:$4 sm:$0xff]   ;;  %v5339_v0 = vld [vmem:[%s6800_s1 + $0x43c] ss:$44 sps:$4 sm:$0xff]  }
  0x71   :  { %1259 = vmatpush1.bf16.msra.mxu0 %v5192_v51  ;;  %1310 = vmatpush1.bf16.msra.mxu1 %v5234_v1  ;;  %v5298_v51 = vld [vmem:[%s6800_s1 + $0x488] ss:$44 sps:$4 sm:$0xff]   ;;  %v5316_v1 = vld [vmem:[%s6800_s1 + $0x20] ss:$44 sps:$4 sm:$0xff]  }
  0x72   :  { %1260 = vmatprep.subr.bf16.mxu0 %v5195_v52  ;;  %1311 = vmatprep.subr.bf16.mxu1 %v5235_v4  ;;  %v5306_v52 = vld [vmem:[%s6800_s1 + $0x4e4] ss:$44 sps:$4 sm:$0xff]   ;;  %v5345_v4 = vld [vmem:[%s6800_s1 + $0x494] ss:$44 sps:$4 sm:$0xff]  }
  0x75   :  { %1261 = vmatpush1.bf16.msra.mxu0 %v5198_v55  ;;  %1312 = vmatpush1.bf16.msra.mxu1 %v5237_v6  ;;  %v5304_v55 = vld [vmem:[%s6800_s1 + $0x4e0] ss:$44 sps:$4 sm:$0xff]   ;;  %v5322_v6 = vld [vmem:[%s6800_s1 + $0x78] ss:$44 sps:$4 sm:$0xff]  }
  0x76   :  { %1336 = vmatprep.subr.bf16.mxu0 %v5242_v57  ;;  %1313 = vmatprep.subr.bf16.mxu1 %v5238_v9  ;;  %v5325_v57 = vld [vmem:[%s6800_s1 + $0x388] ss:$44 sps:$4 sm:$0xff]   ;;  %v5351_v9 = vld [vmem:[%s6800_s1 + $0x4ec] ss:$44 sps:$4 sm:$0xff]  }
  0x78   :  { %1263 = vmatmul.mubr.bf16.vlgmr.msra.gmra.mrb[0].mxu0 %v6286_v59 }
  0x79   :  { %1272 = vmatprep.mubr.bf16.mxu0 %v6291_v60  ;;  %1337 = vmatpush1.bf16.msra.mxu0 %v5240_v62  ;;  %v5318_v62 = vld [vmem:[%s6800_s1 + $0x24] ss:$44 sps:$4 sm:$0xff]  }
  0x7a   :  { %1338 = vmatprep.subr.bf16.mxu0 %v5246_v63  ;;  %1314 = vmatpush1.bf16.msra.mxu1 %v5243_v10  ;;  %v5331_v63 = vld [vmem:[%s6800_s1 + $0x3e0] ss:$44 sps:$4 sm:$0xff]   ;;  %v5328_v10 = vld [vmem:[%s6800_s1 + $0xd0] ss:$44 sps:$4 sm:$0xff]  }
  0x7b   :  { %1389 = vmatprep.subr.bf16.mxu1 %v5267_v13  ;;  %v5357_v13 = vld [vmem:[%s6800_s1 + $0x544] ss:$44 sps:$4 sm:$0xff]  }
  0x7d   :  { %1339 = vmatpush1.bf16.msra.mxu0 %v5244_v2  ;;  %1316 = vmatmul.mubr.bf16.vlgmr.msra.gmra.mrb[0].mxu1 %v6286_v59  ;;  %v5324_v2 = vld [vmem:[%s6800_s1 + $0x7c] ss:$44 sps:$4 sm:$0xff]  }
  0x7e   :  { %1340 = vmatprep.subr.bf16.mxu0 %v5249_v3  ;;  %1325 = vmatprep.mubr.bf16.mxu1 %v6291_v60  ;;  %v5337_v3 = vld [vmem:[%s6800_s1 + $0x438] ss:$44 sps:$4 sm:$0xff]  }
  0x7f   :  { %1390 = vmatpush1.bf16.msra.mxu1 %v5265_v16  ;;  %v5355_v16 = vld [vmem:[%s6800_s1 + $0x540] ss:$44 sps:$4 sm:$0xff]  }
  0x80   :  { %1273 = vmatmul.mubr.bf16.gmra.mrb[4].mxu0 %v6322_v5  ;;  %1391 = vmatprep.subr.bf16.mxu1 %v5273_v17  ;;  %v5340_v17 = vld [vmem:[%s6800_s1 + $0x180] ss:$44 sps:$4 sm:$0xff]  }
  0x81   :  { %1341 = vmatpush1.bf16.msra.mxu0 %v5247_v7  ;;  %1368 = vmatprep.mubr.bf16.mxu0 %v6174_v23  ;;  %v5330_v7 = vld [vmem:[%s6800_s1 + $0xd4] ss:$44 sps:$4 sm:$0xff]  }
  0x82   :  { %1342 = vmatprep.subr.bf16.mxu0 %v5252_v8  ;;  %v5343_v8 = vld [vmem:[%s6800_s1 + $0x490] ss:$44 sps:$4 sm:$0xff]  }
  0x83   :  { %1392 = vmatpush1.bf16.msra.mxu1 %v5271_v20  ;;  %v5362_v20 = vld [vmem:[%s6800_s1 + $0x28] ss:$44 sps:$4 sm:$0xff]  }
  0x84   :  { %1393 = vmatprep.subr.bf16.mxu1 %v5279_v21  ;;  %v5366_v21 = vld [vmem:[%s6800_s1 + $0x340] ss:$44 sps:$4 sm:$0xff]  }
  0x85   :  { %1343 = vmatpush1.bf16.msra.mxu0 %v5250_v11  ;;  %1326 = vmatmul.mubr.bf16.gmra.mrb[4].mxu1 %v6322_v5  ;;  %v5336_v11 = vld [vmem:[%s6800_s1 + $0x12c] ss:$44 sps:$4 sm:$0xff]  }
  0x86   :  { %1344 = vmatprep.subr.bf16.mxu0 %v5255_v12  ;;  %1421 = vmatprep.mubr.bf16.mxu1 %v6174_v23  ;;  %v5349_v12 = vld [vmem:[%s6800_s1 + $0x4e8] ss:$44 sps:$4 sm:$0xff]  }
  0x87   :  { %1394 = vmatpush1.bf16.msra.mxu1 %v5277_v25  ;;  %v5352_v25 = vld [vmem:[%s6800_s1 + $0x230] ss:$44 sps:$4 sm:$0xff]  }
  0x88   :  { %1395 = vmatprep.subr.bf16.mxu1 %v5285_v26  ;;  %v5367_v26 = vld [vmem:[%s6800_s1 + $0x80] ss:$44 sps:$4 sm:$0xff]  }
  0x89   :  { %1345 = vmatpush1.bf16.msra.mxu0 %v5253_v14  ;;  %v5334_v14 = vld [vmem:[%s6800_s1 + $0x128] ss:$44 sps:$4 sm:$0xff]  }
  0x8a   :  { %1346 = vmatprep.subr.bf16.mxu0 %v5258_v15  ;;  %v5342_v15 = vld [vmem:[%s6800_s1 + $0x184] ss:$44 sps:$4 sm:$0xff]  }
  0x8b   :  { %1396 = vmatpush1.bf16.msra.mxu1 %v5283_v29  ;;  %v5358_v29 = vld [vmem:[%s6800_s1 + $0x288] ss:$44 sps:$4 sm:$0xff]  }
  0x8c   :  { %1397 = vmatprep.subr.bf16.mxu1 %v5291_v30  ;;  %v5372_v30 = vld [vmem:[%s6800_s1 + $0xd8] ss:$44 sps:$4 sm:$0xff]  }
  0x8d   :  { %1347 = vmatpush1.bf16.msra.mxu0 %v5256_v18  ;;  %v5361_v18 = vld [vmem:[%s6800_s1 + $0x2e8] ss:$44 sps:$4 sm:$0xff]  }
  0x8e   :  { %1348 = vmatprep.subr.bf16.mxu0 %v5261_v19  ;;  %v5348_v19 = vld [vmem:[%s6800_s1 + $0x1dc] ss:$44 sps:$4 sm:$0xff]  }
  0x8f   :  { %1398 = vmatpush1.bf16.msra.mxu1 %v5289_v33  ;;  %v5363_v33 = vld [vmem:[%s6800_s1 + $0x2e0] ss:$44 sps:$4 sm:$0xff]  }
  0x90   :  { %1399 = vmatprep.subr.bf16.mxu1 %v5297_v34  ;;  %v5377_v34 = vld [vmem:[%s6800_s1 + $0x130] ss:$44 sps:$4 sm:$0xff]  }
  0x91   :  { %1349 = vmatpush1.bf16.msra.mxu0 %v5259_v22  ;;  %v5346_v22 = vld [vmem:[%s6800_s1 + $0x1d8] ss:$44 sps:$4 sm:$0xff]  }
  0x92   :  { %1350 = vmatprep.subr.bf16.mxu0 %v5264_v24  ;;  %v5354_v24 = vld [vmem:[%s6800_s1 + $0x234] ss:$44 sps:$4 sm:$0xff]  }
  0x93   :  { %1400 = vmatpush1.bf16.msra.mxu1 %v5295_v37  ;;  %v5368_v37 = vld [vmem:[%s6800_s1 + $0x338] ss:$44 sps:$4 sm:$0xff]  }
  0x94   :  { %1401 = vmatprep.subr.bf16.mxu1 %v5303_v38  ;;  %v5382_v38 = vld [vmem:[%s6800_s1 + $0x188] ss:$44 sps:$4 sm:$0xff]  }
  0x95   :  { %1351 = vmatpush1.bf16.msra.mxu0 %v5262_v27  ;;  %v5371_v27 = vld [vmem:[%s6800_s1 + $0x398] ss:$44 sps:$4 sm:$0xff]  }
  0x96   :  { %1352 = vmatprep.subr.bf16.mxu0 %v5270_v28  ;;  %v5360_v28 = vld [vmem:[%s6800_s1 + $0x28c] ss:$44 sps:$4 sm:$0xff]  }
  0x97   :  { %1402 = vmatpush1.bf16.msra.mxu1 %v5301_v41  ;;  %v5387_v41 = vld [vmem:[%s6800_s1 + $0x1e0] ss:$44 sps:$4 sm:$0xff]  }
  0x98   :  { %1403 = vmatprep.subr.bf16.mxu1 %v5309_v42  ;;  %v5391_v42 = vld [vmem:[%s6800_s1 + $0x4f8] ss:$44 sps:$4 sm:$0xff]  }
  0x99   :  { %1353 = vmatpush1.bf16.msra.mxu0 %v5268_v31  ;;  %v5376_v31 = vld [vmem:[%s6800_s1 + $0x3f0] ss:$44 sps:$4 sm:$0xff]  }
  0x9a   :  { %1354 = vmatprep.subr.bf16.mxu0 %v5276_v32  ;;  %v5365_v32 = vld [vmem:[%s6800_s1 + $0x2e4] ss:$44 sps:$4 sm:$0xff]  }
  0x9b   :  { %1404 = vmatpush1.bf16.msra.mxu1 %v5307_v45  ;;  %v5392_v45 = vld [vmem:[%s6800_s1 + $0x238] ss:$44 sps:$4 sm:$0xff]  }
  0x9c   :  { %1405 = vmatprep.subr.bf16.mxu1 %v5315_v46  ;;  %v5396_v46 = vld [vmem:[%s6800_s1 + $0x550] ss:$44 sps:$4 sm:$0xff]  }
  0x9d   :  { %1355 = vmatpush1.bf16.msra.mxu0 %v5274_v35  ;;  %v5381_v35 = vld [vmem:[%s6800_s1 + $0x448] ss:$44 sps:$4 sm:$0xff]  }
  0x9e   :  { %1356 = vmatprep.subr.bf16.mxu0 %v5282_v36  ;;  %v5370_v36 = vld [vmem:[%s6800_s1 + $0x33c] ss:$44 sps:$4 sm:$0xff]  }
  0x9f   :  { %1406 = vmatpush1.bf16.msra.mxu1 %v5313_v49  ;;  %v5397_v49 = vld [vmem:[%s6800_s1 + $0x290] ss:$44 sps:$4 sm:$0xff]  }
  0xa0   :  { %1407 = vmatprep.subr.bf16.mxu1 %v5321_v50  ;;  %v5403_v50 = vld [vmem:[#allocation5 + $0x4] ss:$16 sps:$4 sm:$0xff]  }
  0xa1   :  { %1357 = vmatpush1.bf16.msra.mxu0 %v5280_v39  ;;  %v5375_v39 = vld [vmem:[%s6800_s1 + $0x394] ss:$44 sps:$4 sm:$0xff]  }
  0xa2   :  { %1358 = vmatprep.subr.bf16.mxu0 %v5288_v40  ;;  %v5373_v40 = vld [vmem:[%s6800_s1 + $0x390] ss:$44 sps:$4 sm:$0xff]  }
  0xa3   :  { %1408 = vmatpush1.bf16.msra.mxu1 %v5319_v53  ;;  %v5401_v53 = vld [vmem:[#allocation5] ss:$16 sps:$4 sm:$0xff]  }
  0xa4   :  { %1409 = vmatprep.subr.bf16.mxu1 %v5327_v54  ;;  %v5409_v54 = vld [vmem:[#allocation5 + $0x24] ss:$16 sps:$4 sm:$0xff]  }
  0xa5   :  { %1359 = vmatpush1.bf16.msra.mxu0 %v5286_v43  ;;  %v5380_v43 = vld [vmem:[%s6800_s1 + $0x3ec] ss:$44 sps:$4 sm:$0xff]  }
  0xa6   :  { %1360 = vmatprep.subr.bf16.mxu0 %v5294_v44  ;;  %v5378_v44 = vld [vmem:[%s6800_s1 + $0x3e8] ss:$44 sps:$4 sm:$0xff]  }
  0xa7   :  { %1410 = vmatpush1.bf16.msra.mxu1 %v5325_v57  ;;  %v5393_v57 = vld [vmem:[%s6800_s1 + $0x4f0] ss:$44 sps:$4 sm:$0xff]  }
  0xa8   :  { %1411 = vmatprep.subr.bf16.mxu1 %v5333_v58  ;;  %v5415_v58 = vld [vmem:[#allocation5 + $0x44] ss:$16 sps:$4 sm:$0xff]  }
  0xa9   :  { %1361 = vmatpush1.bf16.msra.mxu0 %v5292_v47  ;;  %v5385_v47 = vld [vmem:[%s6800_s1 + $0x444] ss:$44 sps:$4 sm:$0xff]  }
  0xaa   :  { %1362 = vmatprep.subr.bf16.mxu0 %v5300_v48  ;;  %v5383_v48 = vld [vmem:[%s6800_s1 + $0x440] ss:$44 sps:$4 sm:$0xff]  }
  0xab   :  { %1412 = vmatpush1.bf16.msra.mxu1 %v5331_v63  ;;  %v5421_v63 = vld [vmem:[#allocation5 + $0x64] ss:$16 sps:$4 sm:$0xff]  }
  0xac   :  { %1413 = vmatprep.subr.bf16.mxu1 %v5339_v0  ;;  %v5404_v0 = vld [vmem:[#allocation5 + $0x8] ss:$16 sps:$4 sm:$0xff]  }
  0xad   :  { %1363 = vmatpush1.bf16.msra.mxu0 %v5298_v51  ;;  %v5390_v51 = vld [vmem:[%s6800_s1 + $0x49c] ss:$44 sps:$4 sm:$0xff]  }
  0xae   :  { %1364 = vmatprep.subr.bf16.mxu0 %v5306_v52  ;;  %v5388_v52 = vld [vmem:[%s6800_s1 + $0x498] ss:$44 sps:$4 sm:$0xff]  }
  0xaf   :  { %1414 = vmatpush1.bf16.msra.mxu1 %v5337_v3  ;;  %v5412_v3 = vld [vmem:[#allocation5 + $0x2c] ss:$16 sps:$4 sm:$0xff]  }
  0xb0   :  { %1415 = vmatprep.subr.bf16.mxu1 %v5345_v4  ;;  %v5410_v4 = vld [vmem:[#allocation5 + $0x28] ss:$16 sps:$4 sm:$0xff]  }
  0xb1   :  { %1365 = vmatpush1.bf16.msra.mxu0 %v5304_v55  ;;  %v5395_v55 = vld [vmem:[%s6800_s1 + $0x4f4] ss:$44 sps:$4 sm:$0xff]  }
  0xb2   :  { %1366 = vmatprep.subr.bf16.mxu0 %v5312_v56  ;;  %v5407_v56 = vld [vmem:[#allocation5 + $0x20] ss:$16 sps:$4 sm:$0xff]  }
  0xb3   :  { %1416 = vmatpush1.bf16.msra.mxu1 %v5343_v8  ;;  %v5931_v8 = vld [vmem:[%s6799_s0] ss:$8 sps:$4 sm:$0xff]  }
  0xb4   :  { %1417 = vmatprep.subr.bf16.mxu1 %v5351_v9  ;;  %v5418_v9 = vld [vmem:[#allocation5 + $0x4c] ss:$16 sps:$4 sm:$0xff]  }
  0xb5   :  { %1367 = vmatpush1.bf16.msra.mxu0 %v5310_v61  ;;  %v5400_v61 = vld [vmem:[%s6800_s1 + $0x54c] ss:$44 sps:$4 sm:$0xff]  }
  0xb6   :  { %1442 = vmatprep.subr.bf16.mxu0 %v5318_v62  ;;  %v5413_v62 = vld [vmem:[#allocation5 + $0x40] ss:$16 sps:$4 sm:$0xff]  }
  0xb7   :  { %1418 = vmatpush1.bf16.msra.mxu1 %v5349_v12  ;;  %v5439_v12 = vld [vmem:[#allocation5 + $0xc4] ss:$16 sps:$4 sm:$0xff]  }
  0xb8   :  { %1369 = vmatmul.mubr.bf16.vlgmr.msra.gmra.mrb[8].mxu0 %v6286_v59  ;;  %1419 = vmatprep.subr.bf16.mxu1 %v5357_v13  ;;  %v5424_v13 = vld [vmem:[#allocation5 + $0x6c] ss:$16 sps:$4 sm:$0xff]  }
  0xb9   :  { %1443 = vmatpush1.bf16.msra.mxu0 %v5316_v1  ;;  %1378 = vmatprep.mubr.bf16.mxu0 %v6291_v60  ;;  %v5419_v1 = vld [vmem:[#allocation5 + $0x60] ss:$16 sps:$4 sm:$0xff]  }
  0xba   :  { %1444 = vmatprep.subr.bf16.mxu0 %v5324_v2  ;;  %v5427_v2 = vld [vmem:[#allocation5 + $0x84] ss:$16 sps:$4 sm:$0xff]  }
  0xbb   :  { %1420 = vmatpush1.bf16.msra.mxu1 %v5355_v16  ;;  %v5445_v16 = vld [vmem:[#allocation5 + $0xe4] ss:$16 sps:$4 sm:$0xff]  }
  0xbc   :  { %5059 = vmatprep.subr.bf16.mxu1 %v5361_v18  ;;  %v5430_v18 = vld [vmem:[#allocation5 + $0x8c] ss:$16 sps:$4 sm:$0xff]  }
  0xbd   :  { %1445 = vmatpush1.bf16.msra.mxu0 %v5322_v6  ;;  %v5425_v6 = vld [vmem:[#allocation5 + $0x80] ss:$16 sps:$4 sm:$0xff]  }
  0xbe   :  { %1446 = vmatprep.subr.bf16.mxu0 %v5330_v7  ;;  %1422 = vmatmul.mubr.bf16.vlgmr.msra.gmra.mrb[8].mxu1 %v6286_v59  ;;  %v5433_v7 = vld [vmem:[#allocation5 + $0xa4] ss:$16 sps:$4 sm:$0xff]  }
  0xbf   :  { %5060 = vmatpush3.bf16.msra.mxu1 %v5362_v20  ;;  %1431 = vmatprep.mubr.bf16.mxu1 %v6291_v60  ;;  %v5443_v20 = vld [vmem:[#allocation5 + $0xe0] ss:$16 sps:$4 sm:$0xff]  }
  0xc0   :  { %1379 = vmatmul.mubr.bf16.gmra.mrb[12].mxu0 %v6322_v5  ;;  %5061 = vmatprep.subr.bf16.mxu1 %v5366_v21  ;;  %v5451_v21 = vld [vmem:[#allocation5 + $0x104] ss:$16 sps:$4 sm:$0xff]  }
  0xc1   :  { %1447 = vmatpush1.bf16.msra.mxu0 %v5328_v10  ;;  %1474 = vmatprep.mubr.bf16.mxu0 %v6174_v23  ;;  %v5416_v10 = vld [vmem:[#allocation5 + $0x48] ss:$16 sps:$4 sm:$0xff]  }
  0xc2   :  { %1448 = vmatprep.subr.bf16.mxu0 %v5336_v11  ;;  %v5431_v11 = vld [vmem:[#allocation5 + $0xa0] ss:$16 sps:$4 sm:$0xff]  }
  0xc3   :  { %5062 = vmatpush3.bf16.msra.mxu1 %v5367_v26  ;;  %v5457_v26 = vld [vmem:[#allocation5 + $0x124] ss:$16 sps:$4 sm:$0xff]  }
  0xc4   :  { %5063 = vmatprep.subr.bf16.mxu1 %v5371_v27  ;;  %v5442_v27 = vld [vmem:[#allocation5 + $0xcc] ss:$16 sps:$4 sm:$0xff]  }
  0xc5   :  { %1449 = vmatpush1.bf16.msra.mxu0 %v5334_v14  ;;  %v5422_v14 = vld [vmem:[#allocation5 + $0x68] ss:$16 sps:$4 sm:$0xff]  }
  0xc6   :  { %1450 = vmatprep.subr.bf16.mxu0 %v5342_v15  ;;  %1432 = vmatmul.mubr.bf16.gmra.mrb[12].mxu1 %v6322_v5  ;;  %v5437_v15 = vld [vmem:[#allocation5 + $0xc0] ss:$16 sps:$4 sm:$0xff]  }
  0xc7   :  { %5064 = vmatpush3.bf16.msra.mxu1 %v5372_v30  ;;  %1527 = vmatprep.mubr.bf16.mxu1 %v6174_v23  ;;  %v5386_v23 = vld [vmem:[%s6800_s1 + $0x4a0] ss:$44 sps:$4 sm:$0xff]  }
  0xc8   :  { %5065 = vmatprep.subr.bf16.mxu1 %v5376_v31  ;;  %v5463_v30 = vld [vmem:[#allocation5 + $0x144] ss:$16 sps:$4 sm:$0xff]   ;;  %v5448_v31 = vld [vmem:[#allocation5 + $0xec] ss:$16 sps:$4 sm:$0xff]  }
  0xc9   :  { %1451 = vmatpush1.bf16.msra.mxu0 %v5340_v17  ;;  %v5933_v17 = vld [vmem:[%s6799_s0 + $0x10] ss:$8 sps:$4 sm:$0xff]  }
  0xca   :  { %1452 = vmatprep.subr.bf16.mxu0 %v5348_v19  ;;  %v5428_v19 = vld [vmem:[#allocation5 + $0x88] ss:$16 sps:$4 sm:$0xff]  }
  0xcb   :  { %5066 = vmatpush3.bf16.msra.mxu1 %v5377_v34  ;;  %v5469_v34 = vld [vmem:[#allocation5 + $0x164] ss:$16 sps:$4 sm:$0xff]  }
  0xcc   :  { %5067 = vmatprep.subr.bf16.mxu1 %v5381_v35  ;;  %v5454_v35 = vld [vmem:[#allocation5 + $0x10c] ss:$16 sps:$4 sm:$0xff]  }
  0xcd   :  { %1453 = vmatpush1.bf16.msra.mxu0 %v5346_v22  ;;  %v5436_v22 = vld [vmem:[#allocation5 + $0xac] ss:$16 sps:$4 sm:$0xff]  }
  0xce   :  { %1454 = vmatprep.subr.bf16.mxu0 %v5354_v24  ;;  %v5434_v24 = vld [vmem:[#allocation5 + $0xa8] ss:$16 sps:$4 sm:$0xff]  }
  0xcf   :  { %5068 = vmatpush3.bf16.msra.mxu1 %v5382_v38  ;;  %v5475_v38 = vld [vmem:[#allocation5 + $0x184] ss:$16 sps:$4 sm:$0xff]  }
  0xd0   :  { %5069 = vmatprep.subr.bf16.mxu1 %v5386_v23  ;;  %v5460_v23 = vld [vmem:[#allocation5 + $0x12c] ss:$16 sps:$4 sm:$0xff]  }
  0xd1   :  { %1455 = vmatpush1.bf16.msra.mxu0 %v5352_v25  ;;  %v5449_v25 = vld [vmem:[#allocation5 + $0x100] ss:$16 sps:$4 sm:$0xff]  }
  0xd2   :  { %1456 = vmatprep.subr.bf16.mxu0 %v5360_v28  ;;  %v5440_v28 = vld [vmem:[#allocation5 + $0xc8] ss:$16 sps:$4 sm:$0xff]  }
  0xd3   :  { %5070 = vmatpush3.bf16.msra.mxu1 %v5387_v41  ;;  %v5481_v41 = vld [vmem:[#allocation5 + $0x1a4] ss:$16 sps:$4 sm:$0xff]  }
  0xd4   :  { %5071 = vmatprep.subr.bf16.mxu1 %v5391_v42  ;;  %v5466_v42 = vld [vmem:[#allocation5 + $0x14c] ss:$16 sps:$4 sm:$0xff]  }
  0xd5   :  { %1457 = vmatpush1.bf16.msra.mxu0 %v5358_v29  ;;  %v5455_v29 = vld [vmem:[#allocation5 + $0x120] ss:$16 sps:$4 sm:$0xff]  }
  0xd6   :  { %1458 = vmatprep.subr.bf16.mxu0 %v5365_v32  ;;  %v5446_v32 = vld [vmem:[#allocation5 + $0xe8] ss:$16 sps:$4 sm:$0xff]  }
  0xd7   :  { %5072 = vmatpush3.bf16.msra.mxu1 %v5392_v45  ;;  %v5487_v45 = vld [vmem:[#allocation5 + $0x1c4] ss:$16 sps:$4 sm:$0xff]  }
  0xd8   :  { %5073 = vmatprep.subr.bf16.mxu1 %v5396_v46  ;;  %v5472_v46 = vld [vmem:[#allocation5 + $0x16c] ss:$16 sps:$4 sm:$0xff]  }
  0xd9   :  { %1459 = vmatpush1.bf16.msra.mxu0 %v5363_v33  ;;  %v5461_v33 = vld [vmem:[#allocation5 + $0x140] ss:$16 sps:$4 sm:$0xff]  }
  0xda   :  { %1460 = vmatprep.subr.bf16.mxu0 %v5370_v36  ;;  %v5452_v36 = vld [vmem:[#allocation5 + $0x108] ss:$16 sps:$4 sm:$0xff]  }
  0xdb   :  { %5074 = vmatpush3.bf16.msra.mxu1 %v5397_v49  ;;  %v5493_v49 = vld [vmem:[#allocation5 + $0x1e4] ss:$16 sps:$4 sm:$0xff]  }
  0xdc   :  { %3976 = vmatprep.subr.bf16.mxu1 %v5403_v50  ;;  %v5478_v50 = vld [vmem:[#allocation5 + $0x18c] ss:$16 sps:$4 sm:$0xff]  }
  0xdd   :  { %1461 = vmatpush1.bf16.msra.mxu0 %v5368_v37  ;;  %v5467_v37 = vld [vmem:[#allocation5 + $0x160] ss:$16 sps:$4 sm:$0xff]  }
  0xde   :  { %1462 = vmatprep.subr.bf16.mxu0 %v5375_v39  ;;  %1528 = vmatmul.mubr.bf16.vlgmr.msra.gmra.mrb[16].mxu1 %v6286_v59  ;;  %v5398_v59 = vld [vmem:[%s6800_s1 + $0x548] ss:$44 sps:$4 sm:$0xff]  }
  0xdf   :  { %1535 = vmatprep.mubr.bf16.mxu1 %v6291_v60  ;;  %3977 = vmatpush1.bf16.msra.mxu1 %v5401_v53  ;;  %v5406_v60 = vld [vmem:[#allocation5 + $0xc] ss:$16 sps:$4 sm:$0xff]   ;;  %v5458_v39 = vld [vmem:[#allocation5 + $0x128] ss:$16 sps:$4 sm:$0xff]   ;;  %v5499_v53 = vld [vmem:[#allocation5 + $0x204] ss:$16 sps:$4 sm:$0xff]  }
  0xe0   :  { %3978 = vmatprep.subr.bf16.mxu1 %v5409_v54  ;;  %v5484_v54 = vld [vmem:[#allocation5 + $0x1ac] ss:$16 sps:$4 sm:$0xff]  }
  0xe1   :  { %1463 = vmatpush1.bf16.msra.mxu0 %v5373_v40  ;;  %v5473_v40 = vld [vmem:[#allocation5 + $0x180] ss:$16 sps:$4 sm:$0xff]  }
  0xe2   :  { %1464 = vmatprep.subr.bf16.mxu0 %v5380_v43  ;;  %v5464_v43 = vld [vmem:[#allocation5 + $0x148] ss:$16 sps:$4 sm:$0xff]  }
  0xe3   :  { %3979 = vmatpush1.bf16.msra.mxu1 %v5407_v56  ;;  %v5490_v56 = vld [vmem:[#allocation5 + $0x1cc] ss:$16 sps:$4 sm:$0xff]  }
  0xe4   :  { %3980 = vmatprep.subr.bf16.mxu1 %v5415_v58  ;;  %v5496_v58 = vld [vmem:[#allocation5 + $0x1ec] ss:$16 sps:$4 sm:$0xff]  }
  0xe5   :  { %1465 = vmatpush1.bf16.msra.mxu0 %v5378_v44  ;;  %v5479_v44 = vld [vmem:[#allocation5 + $0x1a0] ss:$16 sps:$4 sm:$0xff]  }
  0xe6   :  { %1466 = vmatprep.subr.bf16.mxu0 %v5385_v47  ;;  %1536 = vmatmul.mubr.bf16.gmra.mrb[20].mxu1 %v6322_v5  ;;  %v5932_v5 = vld [vmem:[%s6799_s0 + $0x14] ss:$8 sps:$4 sm:$0xff]   ;;  %s6035_s0 = smov [#allocation8]  }
  0xe7   :  { %3981 = vmatpush1.bf16.msra.mxu1 %v5413_v62  ;;  %v5470_v47 = vld [vmem:[#allocation5 + $0x168] ss:$16 sps:$4 sm:$0xff]   ;;  %v259_v62 = vlaneseq  ;;  %s4517_s6 = sshll.u32 %s6035_s0, 4  ;;  %s4518_s6 = int_to_ptr.vmem [resolvable:$true] %s4517_s6 }
  0xe8   :  { %3982 = vmatprep.subr.bf16.mxu1 %v5421_v63  ;;  %s6000_s7 = scalar_lea.vmem %s4518_s6, 128  ;;  %p6005_p11 = scmp.lt.s32.totalorder %s4518_s6, %s4518_s6 }
  0xe9   :  { %1467 = vmatpush1.bf16.msra.mxu0 %v5383_v48  ;;  %v5485_v48 = vld [vmem:[#allocation5 + $0x1c0] ss:$16 sps:$4 sm:$0xff]   ;;  %v6680_v63 = vshrl.u32 %v259_v62, 7  ;;  %p6001_p10 = scmp.ne.s32.totalorder %s4518_s6, %s6000_s7  ;;  %p6006_p12 = scmp.lt.s32.totalorder %s6000_s7, %s6000_s7 }
  0xea   :  { %1468 = vmatprep.subr.bf16.mxu0 %v5390_v51  ;;  %v5476_v51 = vld [vmem:[#allocation5 + $0x188] ss:$16 sps:$4 sm:$0xff]  }
  0xeb   :  { %3983 = vmatpush1.bf16.msra.mxu1 %v5419_v1  ;;  %v6688_v1 = vsub.s32 1, %v6680_v63  ;;  %p6007_p13 = por %p6006_p12, %p6005_p11 }
  0xec   :  { %3984 = vmatprep.subr.bf16.mxu1 %v5427_v2 }
  0xed   :  { %1469 = vmatpush1.bf16.msra.mxu0 %v5388_v52  ;;  %v5491_v52 = vld [vmem:[#allocation5 + $0x1e0] ss:$16 sps:$4 sm:$0xff]   ;;  %p6008_p0 = pnand %p6007_p13, %p6001_p10 }
  0xee   :  { %1470 = vmatprep.subr.bf16.mxu0 %v5395_v55  ;;  %v5482_v55 = vld [vmem:[#allocation5 + $0x1a8] ss:$16 sps:$4 sm:$0xff]  }
  0xef   :  { %3985 = vmatpush1.bf16.msra.mxu1 %v5425_v6 }
  0xf0   :  { %3986 = vmatprep.subr.bf16.mxu1 %v5433_v7 }
  0xf1   :  { %1471 = vmatpush1.bf16.msra.mxu0 %v5393_v57  ;;  %v5488_v57 = vld [vmem:[#allocation5 + $0x1c8] ss:$16 sps:$4 sm:$0xff]  }
  0xf2   :  { %1472 = vmatprep.subr.bf16.mxu0 %v5400_v61  ;;  %v5494_v61 = vld [vmem:[#allocation5 + $0x1e8] ss:$16 sps:$4 sm:$0xff]  }
  0xf3   :  { %3987 = vmatpush1.bf16.msra.mxu1 %v5431_v11 }
  0xf4   :  { %3988 = vmatprep.subr.bf16.mxu1 %v5439_v12 }
  0xf5   :  { %1473 = vmatpush1.bf16.msra.mxu0 %v5398_v59  ;;  %v5502_v59 = vld [vmem:[#allocation5 + $0x20c] ss:$16 sps:$4 sm:$0xff]  }
  0xf6   :  { %4222 = vmatprep.subr.bf16.mxu0 %v5406_v60  ;;  %v6682_v60 = vld [vmem:[#allocation2] sm:$0xff] }
  0xf7   :  { %3989 = vmatpush1.bf16.msra.mxu1 %v5437_v15 }
  0xf8   :  { %1475 = vmatmul.mubr.bf16.vlgmr.msra.gmra.mrb[16].mxu0 %v5931_v8  ;;  %3990 = vmatprep.subr.bf16.mxu1 %v5445_v16 }
  0xf9   :  { %1484 = vmatprep.mubr.bf16.mxu0 %v5932_v5  ;;  %4223 = vmatpush1.bf16.msra.mxu0 %v5404_v0  ;;  %v6685_v0 = vsub.s32 0, %v6680_v63 }
  0xfa   :  { %4224 = vmatprep.subr.bf16.mxu0 %v5412_v3  ;;  %v266_v3 = vrot.slane %v6682_v60, %v6688_v1 }
  0xfb   :  { %3991 = vmatpush1.bf16.msra.mxu1 %v5443_v20  ;;  %v262_v2 = vrot.slane %v6682_v60, %v6685_v0 }
  0xfc   :  { %3992 = vmatprep.subr.bf16.mxu1 %v5451_v21 }
  0xfd   :  { %4225 = vmatpush1.bf16.msra.mxu0 %v5410_v4 }
  0xfe   :  { %4226 = vmatprep.subr.bf16.mxu0 %v5418_v9 }
  0xff   :  { %3993 = vmatpush1.bf16.msra.mxu1 %v5449_v25 }
 0x100   :  { %1485 = vmatmul.mubr.bf16.gmra.mrb[20].mxu0 %v5933_v17  ;;  %3994 = vmatprep.subr.bf16.mxu1 %v5457_v26  ;;  %v6695_v26 = vsub.s32 2, %v6680_v63 }
 0x101   :  { %4227 = vmatpush1.bf16.msra.mxu0 %v5416_v10 }
 0x102   :  { %4228 = vmatprep.subr.bf16.mxu0 %v5424_v13 }
 0x103   :  { %3995 = vmatpush1.bf16.msra.mxu1 %v5455_v29 }
 0x104   :  { %3996 = vmatprep.subr.bf16.mxu1 %v5463_v30  ;;  %v273_v30 = vsub.s32 3, %v6680_v63 }
 0x105   :  { %4229 = vmatpush1.bf16.msra.mxu0 %v5422_v14 }
 0x106   :  { %4230 = vmatprep.subr.bf16.mxu0 %v5430_v18 }
 0x107   :  { %3997 = vmatpush1.bf16.msra.mxu1 %v5461_v33 }
 0x108   :  { %3998 = vmatprep.subr.bf16.mxu1 %v5469_v34 }
 0x109   :  { %4231 = vmatpush1.bf16.msra.mxu0 %v5428_v19 }
 0x10a   :  { %4232 = vmatprep.subr.bf16.mxu0 %v5436_v22 }
 0x10b   :  { %3999 = vmatpush1.bf16.msra.mxu1 %v5467_v37 }
 0x10c   :  { %4000 = vmatprep.subr.bf16.mxu1 %v5475_v38 }
 0x10d   :  { %4233 = vmatpush1.bf16.msra.mxu0 %v5434_v24 }
 0x10e   :  { %4234 = vmatprep.subr.bf16.mxu0 %v5442_v27 }
 0x10f   :  { %4001 = vmatpush1.bf16.msra.mxu1 %v5473_v40 }
 0x110   :  { %4002 = vmatprep.subr.bf16.mxu1 %v5481_v41  ;;  %v274_v41 = vrot.slane %v6682_v60, %v273_v30 }
 0x111   :  { %4235 = vmatpush1.bf16.msra.mxu0 %v5440_v28 }
 0x112   :  { %4236 = vmatprep.subr.bf16.mxu0 %v5448_v31 }
 0x113   :  { %4003 = vmatpush1.bf16.msra.mxu1 %v5479_v44 }
 0x114   :  { %4004 = vmatprep.subr.bf16.mxu1 %v5487_v45 }
 0x115   :  { %4237 = vmatpush1.bf16.msra.mxu0 %v5446_v32 }
 0x116   :  { %4238 = vmatprep.subr.bf16.mxu0 %v5454_v35 }
 0x117   :  { %4005 = vmatpush1.bf16.msra.mxu1 %v5485_v48 }
 0x118   :  { %4006 = vmatprep.subr.bf16.mxu1 %v5493_v49 }
 0x119   :  { %4239 = vmatpush1.bf16.msra.mxu0 %v5452_v36 }
 0x11a   :  { %4240 = vmatprep.subr.bf16.mxu0 %v5460_v23  ;;  %v270_v23 = vrot.slane %v6682_v60, %v6695_v26 }
 0x11b   :  { %4007 = vmatpush1.bf16.msra.mxu1 %v5491_v52 }
 0x11c   :  { %4017 = vmatprep.subr.bf16.mxu1 %v5499_v53 }
 0x11d   :  { %4241 = vmatpush1.bf16.msra.mxu0 %v5458_v39 }
 0x11e   :  { %4242 = vmatprep.subr.bf16.mxu0 %v5466_v42 }
 0x121   :  { %4243 = vmatpush1.bf16.msra.mxu0 %v5464_v43 }
 0x122   :  { %4244 = vmatprep.subr.bf16.mxu0 %v5472_v46 }
 0x125   :  { %4245 = vmatpush1.bf16.msra.mxu0 %v5470_v47 }
 0x126   :  { %4246 = vmatprep.subr.bf16.mxu0 %v5478_v50 }
 0x129   :  { %4247 = vmatpush1.bf16.msra.mxu0 %v5476_v51 }
 0x12a   :  { %4248 = vmatprep.subr.bf16.mxu0 %v5484_v54 }
 0x12d   :  { %4249 = vmatpush1.bf16.msra.mxu0 %v5482_v55 }
 0x12e   :  { %4250 = vmatprep.subr.bf16.mxu0 %v5490_v56 }
 0x131   :  { %4251 = vmatpush1.bf16.msra.mxu0 %v5488_v57 }
 0x132   :  { %4252 = vmatprep.subr.bf16.mxu0 %v5496_v58 }
 0x135   :  { %4253 = vmatpush1.bf16.msra.mxu0 %v5494_v61 }
 0x136   :  { %4263 = vmatprep.subr.bf16.mxu0 %v5502_v59 }
 0x14b   :  { %v1264_v4 = vpop.f32.mrb[0].mxu0 }
 0x14c   :  { %v1265_v6 = vadd.f32 %v1264_v4, %v262_v2  ;;  %v1266_v7 = vpop.f32.mrb[1].mxu0 }
 0x14d   :  { %v1267_v8 = vadd.f32 %v1266_v7, %v266_v3  ;;  %v1268_v5 = vpop.f32.mrb[2].mxu0 }
 0x14e   :  { %v1269_v9 = vadd.f32 %v1268_v5, %v262_v2  ;;  %v1270_v10 = vpop.f32.mrb[3].mxu0  ;;  %v1544_v12 = vmax.f32 %v1265_v6, 0.0 }
 0x14f   :  { %v1271_v11 = vadd.f32 %v1270_v10, %v266_v3  ;;  %v1545_v14 = vmax.f32 %v1267_v8, 0.0 }
 0x150   :  { %v1555_v13 = vmax.f32 %v1269_v9, 0.0  ;;  %v1317_v45 = vpop.f32.mrb[0].mxu1 }
 0x151   :  { %v1556_v15 = vmax.f32 %v1271_v11, 0.0  ;;  %v1318_v48 = vadd.f32 %v1317_v45, %v270_v23  ;;  %v1319_v49 = vpop.f32.mrb[1].mxu1 }
 0x152   :  { %v1588_v16 = vadd.f32 %v1555_v13, %v1544_v12  ;;  %v1320_v52 = vadd.f32 %v1319_v49, %v274_v41  ;;  %v1321_v53 = vpop.f32.mrb[2].mxu1 }
 0x153   :  { %v1595_v17 = vadd.f32 %v1556_v15, %v1545_v14  ;;  %v1274_v18 = vpop.f32.mrb[4].mxu0  ;;  %v1546_v55 = vmax.f32 %v1318_v48, 0.0  ;;  %v1322_v56 = vadd.f32 %v1321_v53, %v270_v23  ;;  %v1323_v57 = vpop.f32.mrb[3].mxu1 }
 0x154   :  { %v1589_v19 = vrot.slane %v1588_v16, 4  ;;  %v1275_v20 = vadd.f32 %v1274_v18, %v262_v2  ;;  %v1276_v21 = vpop.f32.mrb[5].mxu0  ;;  %v1547_v61 = vmax.f32 %v1320_v52, 0.0  ;;  %v1324_v59 = vadd.f32 %v1323_v57, %v274_v41  ;;  %v5500_v52 = vld [vmem:[#allocation5 + $0x208] ss:$16 sps:$4 sm:$0xff]  }
 0x155   :  { %v1596_v22 = vrot.slane %v1595_v17, 4  ;;  %v1277_v24 = vadd.f32 %v1276_v21, %v266_v3  ;;  %v1278_v25 = vpop.f32.mrb[6].mxu0  ;;  %v5508_v57 = vld [vmem:[#allocation5 + $0x22c] ss:$16 sps:$4 sm:$0xff]  }
 0x156   :  { %v1590_v27 = vadd.f32 %v1589_v19, %v1588_v16  ;;  %v1279_v28 = vadd.f32 %v1278_v25, %v262_v2  ;;  %v1280_v29 = vpop.f32.mrb[7].mxu0  ;;  %v1566_v34 = vmax.f32 %v1275_v20, 0.0  ;;  %v1558_v7 = vmax.f32 %v1324_v59, 0.0 }
 0x157   :  { %v1597_v31 = vadd.f32 %v1596_v22, %v1595_v17  ;;  %v1281_v32 = vadd.f32 %v1280_v29, %v266_v3  ;;  %v1567_v37 = vmax.f32 %v1277_v24, 0.0  ;;  %v1557_v3 = vmax.f32 %v1322_v56, 0.0  ;;  %v5505_v56 = vld [vmem:[#allocation5 + $0x224] ss:$16 sps:$4 sm:$0xff]  }
 0x158   :  { %v1591_v33 = vrot.slane %v1590_v27, 2  ;;  %v1577_v35 = vmax.f32 %v1279_v28, 0.0  ;;  %v1609_v10 = vadd.f32 %v1558_v7, %v1547_v61  ;;  %v1327_v11 = vpop.f32.mrb[4].mxu1  ;;  %v5511_v7 = vld [vmem:[#allocation5 + $0x244] ss:$16 sps:$4 sm:$0xff]  }
 0x159   :  { %v1598_v36 = vrot.slane %v1597_v31, 2  ;;  %v1578_v38 = vmax.f32 %v1281_v32, 0.0  ;;  %v1602_v5 = vadd.f32 %v1557_v3, %v1546_v55  ;;  %v1328_v15 = vadd.f32 %v1327_v11, %v270_v23  ;;  %v1329_v16 = vpop.f32.mrb[5].mxu1  ;;  %v5506_v3 = vld [vmem:[#allocation5 + $0x228] ss:$16 sps:$4 sm:$0xff]  }
 0x15a   :  { %v1592_v39 = vadd.f32 %v1591_v33, %v1590_v27  ;;  %v1665_v40 = vadd.f32 %v1577_v35, %v1566_v34  ;;  %v1610_v19 = vrot.slane %v1609_v10, 4  ;;  %v1330_v20 = vadd.f32 %v1329_v16, %v274_v41  ;;  %v1331_v21 = vpop.f32.mrb[6].mxu1  ;;  %v5517_v16 = vld [vmem:[#allocation5 + $0x264] ss:$16 sps:$4 sm:$0xff]  }
 0x15b   :  { %v1599_v42 = vadd.f32 %v1598_v36, %v1597_v31  ;;  %v1672_v43 = vadd.f32 %v1578_v38, %v1567_v37  ;;  %v1603_v14 = vrot.slane %v1602_v5, 4  ;;  %v1568_v25 = vmax.f32 %v1328_v15, 0.0  ;;  %v1333_v28 = vpop.f32.mrb[7].mxu1 }
 0x15c   :  { %v1666_v44 = vrot.slane %v1665_v40, 4  ;;  %v1593_v46 = vrot.slane %v1592_v39, 1  ;;  %v1332_v27 = vadd.f32 %v1331_v21, %v270_v23  ;;  %v1611_v31 = vadd.f32 %v1610_v19, %v1609_v10 }
 0x15d   :  { %v1673_v47 = vrot.slane %v1672_v43, 4  ;;  %v1600_v50 = vrot.slane %v1599_v42, 1  ;;  %v1604_v24 = vadd.f32 %v1603_v14, %v1602_v5  ;;  %v1569_v32 = vmax.f32 %v1330_v20, 0.0 }
 0x15e   :  { %v1667_v51 = vadd.f32 %v1666_v44, %v1665_v40  ;;  %v1594_v62 = vadd.f32 %v1593_v46, %v1592_v39  ;;  %v1334_v33 = vadd.f32 %v1333_v28, %v274_v41  ;;  %v1579_v36 = vmax.f32 %v1332_v27, 0.0  ;;  %v5523_v28 = vld [vmem:[#allocation5 + $0x284] ss:$16 sps:$4 sm:$0xff]  }
 0x15f   :  { %v1674_v54 = vadd.f32 %v1673_v47, %v1672_v43  ;;  %v1601_v4 = vadd.f32 %v1600_v50, %v1599_v42  ;;  %v1605_v35 = vrot.slane %v1604_v24, 2  ;;  %v1612_v39 = vrot.slane %v1611_v31, 2 }
 0x160   :  { %v1668_v58 = vrot.slane %v1667_v51, 2  ;;  %v1742_v12 = vpack.c.bf16 %v1594_v62, %v1594_v62  ;;  %v1580_v40 = vmax.f32 %v1334_v33, 0.0  ;;  %v1679_v45 = vadd.f32 %v1579_v36, %v1568_v25 }
 0x161   :  { %v1675_v2 = vrot.slane %v1674_v54, 2  ;;  %v1743_v18 = vpack.c.bf16 %v1601_v4, %v1601_v4  ;;  %v1606_v44 = vadd.f32 %v1605_v35, %v1604_v24  ;;  %v1613_v23 = vadd.f32 %v1612_v39, %v1611_v31  ;;  %v5518_v24 = vld [vmem:[#allocation5 + $0x268] ss:$16 sps:$4 sm:$0xff]  }
 0x162   :  { %v1669_v6 = vadd.f32 %v1668_v58, %v1667_v51  ;;  %v2160_v37 = vunpack.c.l.b16 %v1742_v12  ;;  %v1686_v47 = vadd.f32 %v1580_v40, %v1569_v32  ;;  %v1680_v41 = vrot.slane %v1679_v45, 4  ;;  %v5497_v51 = vld [vmem:[#allocation5 + $0x200] ss:$16 sps:$4 sm:$0xff]   ;;  %v5524_v35 = vld [vmem:[#allocation5 + $0x288] ss:$16 sps:$4 sm:$0xff]  }
 0x163   :  { %v1676_v8 = vadd.f32 %v1675_v2, %v1674_v54  ;;  %v2161_v42 = vunpack.c.l.b16 %v1743_v18  ;;  %v1607_v49 = vrot.slane %v1606_v44, 1  ;;  %v1614_v53 = vrot.slane %v1613_v23, 1  ;;  %v5503_v2 = vld [vmem:[#allocation5 + $0x220] ss:$16 sps:$4 sm:$0xff]  }
 0x164   :  { %v1670_v9 = vrot.slane %v1669_v6, 1  ;;  %v1687_v54 = vrot.slane %v1686_v47, 4  ;;  %v1681_v58 = vadd.f32 %v1680_v41, %v1679_v45  ;;  %v5509_v12 = vld [vmem:[#allocation5 + $0x240] ss:$16 sps:$4 sm:$0xff]   ;;  %v277_v45 = vsub.s32 4, %v6680_v63 }
 0x165   :  { %v1677_v13 = vrot.slane %v1676_v8, 1  ;;  %v1608_v59 = vadd.f32 %v1607_v49, %v1606_v44  ;;  %v1615_v4 = vadd.f32 %v1614_v53, %v1613_v23  ;;  %v5527_v40 = vld [vmem:[#allocation5 + $0x2a0] ss:$16 sps:$4 sm:$0xff]   ;;  %v5538_v44 = vld [vmem:[#allocation5 + $0x2cc] ss:$16 sps:$4 sm:$0xff]  }
 0x166   :  { %v1671_v17 = vadd.f32 %v1670_v9, %v1669_v6  ;;  %v1688_v61 = vadd.f32 %v1687_v54, %v1686_v47  ;;  %v1682_v62 = vrot.slane %v1681_v58, 2  ;;  %v5533_v23 = vld [vmem:[#allocation5 + $0x2c0] ss:$16 sps:$4 sm:$0xff]   ;;  %v5536_v47 = vld [vmem:[#allocation5 + $0x2c8] ss:$16 sps:$4 sm:$0xff]   ;;  %v278_v41 = vrot.slane %v6682_v60, %v277_v45 }
 0x167   :  { %v1678_v22 = vadd.f32 %v1677_v13, %v1676_v8  ;;  %v5514_v8 = vld [vmem:[#allocation5 + $0x24c] ss:$16 sps:$4 sm:$0xff]   ;;  %v1744_v10 = vpack.c.bf16 %v1608_v59, %v1608_v59  ;;  %v5512_v13 = vld [vmem:[#allocation5 + $0x248] ss:$16 sps:$4 sm:$0xff]   ;;  %v1745_v15 = vpack.c.bf16 %v1615_v4, %v1615_v4  ;;  %v5547_v53 = vld [vmem:[#allocation5 + $0x304] ss:$16 sps:$4 sm:$0xff]  }
 0x168   :  { %v1753_v29 = vpack.c.bf16 %v1671_v17, %v1671_v17  ;;  %v1689_v6 = vrot.slane %v1688_v61, 2  ;;  %v1683_v5 = vadd.f32 %v1682_v62, %v1681_v58  ;;  %v5520_v17 = vld [vmem:[#allocation5 + $0x26c] ss:$16 sps:$4 sm:$0xff]   ;;  %v5545_v59 = vld [vmem:[#allocation5 + $0x300] ss:$16 sps:$4 sm:$0xff]  }
 0x169   :  { %v1754_v34 = vpack.c.bf16 %v1678_v22, %v1678_v22  ;;  %v2162_v20 = vunpack.c.l.b16 %v1744_v10  ;;  %v5515_v22 = vld [vmem:[#allocation5 + $0x260] ss:$16 sps:$4 sm:$0xff]   ;;  %v2163_v27 = vunpack.c.l.b16 %v1745_v15  ;;  %v5544_v49 = vld [vmem:[#allocation5 + $0x2ec] ss:$16 sps:$4 sm:$0xff]   ;;  %v5548_v62 = vld [vmem:[#allocation5 + $0x308] ss:$16 sps:$4 sm:$0xff]  }
 0x16a   :  { %v2171_v38 = vunpack.c.l.b16 %v1753_v29  ;;  %v1690_v9 = vadd.f32 %v1689_v6, %v1688_v61  ;;  %v1684_v11 = vrot.slane %v1683_v5, 1  ;;  %v5526_v29 = vld [vmem:[#allocation5 + $0x28c] ss:$16 sps:$4 sm:$0xff]   ;;  %v5553_v6 = vld [vmem:[#allocation5 + $0x324] ss:$16 sps:$4 sm:$0xff]  }
 0x16b   :  { %v2172_v43 = vunpack.c.l.b16 %v1754_v34  ;;  %v5521_v34 = vld [vmem:[#allocation5 + $0x280] ss:$16 sps:$4 sm:$0xff]   ;;  %v5550_v54 = vld [vmem:[#allocation5 + $0x30c] ss:$16 sps:$4 sm:$0xff]  }
 0x16c   :  { %v2183_v46 = vsel %vm2182_vm0, %v2171_v38, %v2160_v37  ;;  %v1691_v14 = vrot.slane %v1690_v9, 1  ;;  %v1685_v18 = vadd.f32 %v1684_v11, %v1683_v5  ;;  %v5529_v37 = vld [vmem:[#allocation5 + $0x2a4] ss:$16 sps:$4 sm:$0xff]   ;;  %v5532_v38 = vld [vmem:[#allocation5 + $0x2ac] ss:$16 sps:$4 sm:$0xff]  }
 0x16d   :  { %v2184_v48 = vsel %vm2182_vm0, %v2172_v43, %v2161_v42  ;;  %v2194_v55 = vpack.c.b16 %v2183_v46, %v2183_v46  ;;  %v5530_v42 = vld [vmem:[#allocation5 + $0x2a8] ss:$16 sps:$4 sm:$0xff]   ;;  %v5535_v43 = vld [vmem:[#allocation5 + $0x2c4] ss:$16 sps:$4 sm:$0xff]   ;;  %v281_v46 = vsub.s32 5, %v6680_v63 }
 0x16e   :  { %v2195_v50 = vpack.c.b16 %v2184_v48, %v2184_v48  ;;  %v1692_v19 = vadd.f32 %v1691_v14, %v1690_v9  ;;  %v1755_v21 = vpack.c.bf16 %v1685_v18, %v1685_v18  ;;  %v5541_v48 = vld [vmem:[#allocation5 + $0x2e4] ss:$16 sps:$4 sm:$0xff]   ;;  %v5551_v11 = vld [vmem:[#allocation5 + $0x320] ss:$16 sps:$4 sm:$0xff]   ;;  %v5562_v15 = vld [vmem:[#allocation5 + $0x34c] ss:$16 sps:$4 sm:$0xff]  }
 0x16f   :  { %v5559_v14 = vld [vmem:[#allocation5 + $0x344] ss:$16 sps:$4 sm:$0xff]  }
 0x170   :  { %4008 = vmatprep.mubr.bf16.mxu1 %v2195_v50  ;;  %4254 = vmatprep.mubr.bf16.mxu0 %v2195_v50  ;;  %v1756_v25 = vpack.c.bf16 %v1692_v19, %v1692_v19  ;;  %v2173_v31 = vunpack.c.l.b16 %v1755_v21  ;;  %v282_v50 = vrot.slane %v6682_v60, %v281_v46  ;;  %v5557_v21 = vld [vmem:[#allocation5 + $0x340] ss:$16 sps:$4 sm:$0xff]  }
 0x171   :  { %4009 = vmatmul.mubr.bf16.vlgmr.msra.gmra.mrb[24].mxu1 %v2194_v55  ;;  %4255 = vmatmul.mubr.bf16.vlgmr.msra.gmra.mrb[24].mxu0 %v2194_v55  ;;  %v5563_v46 = vld [vmem:[#allocation5 + $0x360] ss:$16 sps:$4 sm:$0xff]  }
 0x172   :  { %4018 = vmatpush1.bf16.msra.mxu1 %v5497_v51  ;;  %4264 = vmatpush1.bf16.msra.mxu0 %v5500_v52  ;;  %v2174_v32 = vunpack.c.l.b16 %v1756_v25  ;;  %v6706_v33 = vsel %vm2182_vm0, %v2173_v31, %v2162_v20  ;;  %v5539_v51 = vld [vmem:[#allocation5 + $0x2e0] ss:$16 sps:$4 sm:$0xff]   ;;  %v5542_v52 = vld [vmem:[#allocation5 + $0x2e8] ss:$16 sps:$4 sm:$0xff]  }
 0x173   :  { %4019 = vmatprep.subr.bf16.mxu1 %v5505_v56  ;;  %4265 = vmatprep.subr.bf16.mxu0 %v5508_v57 }
 0x174   :  { %v2186_v36 = vsel %vm2182_vm0, %v2174_v32, %v2163_v27  ;;  %v5560_v27 = vld [vmem:[#allocation5 + $0x348] ss:$16 sps:$4 sm:$0xff]  }
 0x175   :  { %v2197_v39 = vpack.c.b16 %v2186_v36, %v2186_v36  ;;  %v5568_v36 = vld [vmem:[#allocation5 + $0x36c] ss:$16 sps:$4 sm:$0xff]  }
 0x176   :  { %4020 = vmatpush1.bf16.msra.mxu1 %v5503_v2  ;;  %4266 = vmatpush1.bf16.msra.mxu0 %v5506_v3 }
 0x177   :  { %4021 = vmatprep.subr.bf16.mxu1 %v5511_v7  ;;  %4267 = vmatprep.subr.bf16.mxu0 %v5514_v8  ;;  %v5556_v7 = vld [vmem:[#allocation5 + $0x32c] ss:$16 sps:$4 sm:$0xff]  }
 0x178   :  { %4049 = vmatprep.mubr.bf16.mxu1 %v2197_v39  ;;  %4295 = vmatprep.mubr.bf16.mxu0 %v2197_v39 }
 0x17a   :  { %4022 = vmatpush1.bf16.msra.mxu1 %v5509_v12  ;;  %4268 = vmatpush1.bf16.msra.mxu0 %v5512_v13  ;;  %v5554_v12 = vld [vmem:[#allocation5 + $0x328] ss:$16 sps:$4 sm:$0xff]  }
 0x17b   :  { %4023 = vmatprep.subr.bf16.mxu1 %v5517_v16  ;;  %4269 = vmatprep.subr.bf16.mxu0 %v5520_v17 }
 0x17e   :  { %4024 = vmatpush1.bf16.msra.mxu1 %v5515_v22  ;;  %4270 = vmatpush1.bf16.msra.mxu0 %v5518_v24 }
 0x17f   :  { %4025 = vmatprep.subr.bf16.mxu1 %v5523_v28  ;;  %4271 = vmatprep.subr.bf16.mxu0 %v5526_v29 }
 0x182   :  { %4026 = vmatpush1.bf16.msra.mxu1 %v5521_v34  ;;  %4272 = vmatpush1.bf16.msra.mxu0 %v5524_v35  ;;  %v285_v34 = vsub.s32 6, %v6680_v63  ;;  %v5565_v35 = vld [vmem:[#allocation5 + $0x364] ss:$16 sps:$4 sm:$0xff]  }
 0x183   :  { %4027 = vmatprep.subr.bf16.mxu1 %v5529_v37  ;;  %4273 = vmatprep.subr.bf16.mxu0 %v5532_v38 }
 0x186   :  { %4028 = vmatpush1.bf16.msra.mxu1 %v5527_v40  ;;  %4274 = vmatpush1.bf16.msra.mxu0 %v5530_v42  ;;  %v289_v40 = vsub.s32 7, %v6680_v63 }
 0x187   :  { %4029 = vmatprep.subr.bf16.mxu1 %v5535_v43  ;;  %4275 = vmatprep.subr.bf16.mxu0 %v5538_v44 }
 0x18a   :  { %4030 = vmatpush1.bf16.msra.mxu1 %v5533_v23  ;;  %4276 = vmatpush1.bf16.msra.mxu0 %v5536_v47  ;;  %v5566_v23 = vld [vmem:[#allocation5 + $0x368] ss:$16 sps:$4 sm:$0xff]  }
 0x18b   :  { %4031 = vmatprep.subr.bf16.mxu1 %v5541_v48  ;;  %4277 = vmatprep.subr.bf16.mxu0 %v5544_v49  ;;  %v1370_v55 = vpop.f32.mrb[8].mxu0  ;;  %v6716_v49 = vrot.slane %v6682_v60, %v285_v34 }
 0x18c   :  { %v1371_v56 = vadd.f32 %v1370_v55, %v278_v41  ;;  %v1372_v57 = vpop.f32.mrb[9].mxu0 }
 0x18d   :  { %v1373_v58 = vadd.f32 %v1372_v57, %v282_v50  ;;  %v1374_v61 = vpop.f32.mrb[10].mxu0 }
 0x18e   :  { %4032 = vmatpush1.bf16.msra.mxu1 %v5539_v51  ;;  %4278 = vmatpush1.bf16.msra.mxu0 %v5542_v52  ;;  %v1548_v2 = vmax.f32 %v1371_v56, 0.0  ;;  %v1375_v3 = vadd.f32 %v1374_v61, %v278_v41  ;;  %v1376_v4 = vpop.f32.mrb[11].mxu0  ;;  %v5574_v51 = vld [vmem:[#allocation5 + $0x38c] ss:$16 sps:$4 sm:$0xff]   ;;  %v5569_v61 = vld [vmem:[#allocation5 + $0x380] ss:$16 sps:$4 sm:$0xff]  }
 0x18f   :  { %4033 = vmatprep.subr.bf16.mxu1 %v5547_v53  ;;  %4279 = vmatprep.subr.bf16.mxu0 %v5550_v54  ;;  %v1549_v8 = vmax.f32 %v1373_v58, 0.0  ;;  %v1377_v5 = vadd.f32 %v1376_v4, %v282_v50  ;;  %v6719_v53 = vrot.slane %v6682_v60, %v289_v40 }
 0x190   :  { %v1559_v9 = vmax.f32 %v1375_v3, 0.0 }
 0x191   :  { %v1560_v10 = vmax.f32 %v1377_v5, 0.0  ;;  %v1423_v58 = vpop.f32.mrb[8].mxu1 }
 0x192   :  { %4034 = vmatpush1.bf16.msra.mxu1 %v5545_v59  ;;  %4280 = vmatpush1.bf16.msra.mxu0 %v5548_v62  ;;  %v1616_v13 = vadd.f32 %v1559_v9, %v1548_v2  ;;  %v5572_v59 = vld [vmem:[#allocation5 + $0x388] ss:$16 sps:$4 sm:$0xff]   ;;  %v1424_v3 = vadd.f32 %v1423_v58, %v6716_v49  ;;  %v1425_v4 = vpop.f32.mrb[9].mxu1 }
 0x193   :  { %4035 = vmatprep.subr.bf16.mxu1 %v5553_v6  ;;  %4281 = vmatprep.subr.bf16.mxu0 %v5556_v7  ;;  %v1623_v16 = vadd.f32 %v1560_v10, %v1549_v8  ;;  %v1380_v17 = vpop.f32.mrb[12].mxu0  ;;  %v5577_v6 = vld [vmem:[#allocation5 + $0x3a4] ss:$16 sps:$4 sm:$0xff]   ;;  %v5580_v7 = vld [vmem:[#allocation5 + $0x3ac] ss:$16 sps:$4 sm:$0xff]   ;;  %v1426_v5 = vadd.f32 %v1425_v4, %v6719_v53  ;;  %v1427_v9 = vpop.f32.mrb[10].mxu1 }
 0x194   :  { %v1617_v18 = vrot.slane %v1616_v13, 4  ;;  %v1381_v19 = vadd.f32 %v1380_v17, %v278_v41  ;;  %v1382_v20 = vpop.f32.mrb[13].mxu0  ;;  %v5575_v17 = vld [vmem:[#allocation5 + $0x3a0] ss:$16 sps:$4 sm:$0xff]  }
 0x195   :  { %v1624_v22 = vrot.slane %v1623_v16, 4  ;;  %v1383_v24 = vadd.f32 %v1382_v20, %v282_v50  ;;  %v1384_v25 = vpop.f32.mrb[14].mxu0 }
 0x196   :  { %4036 = vmatpush1.bf16.msra.mxu1 %v5551_v11  ;;  %4282 = vmatpush1.bf16.msra.mxu0 %v5554_v12  ;;  %v1618_v28 = vadd.f32 %v1617_v18, %v1616_v13  ;;  %v1570_v29 = vmax.f32 %v1381_v19, 0.0  ;;  %v1385_v31 = vadd.f32 %v1384_v25, %v278_v41  ;;  %v1386_v32 = vpop.f32.mrb[15].mxu0  ;;  %v5571_v41 = vld [vmem:[#allocation5 + $0x384] ss:$16 sps:$4 sm:$0xff]   ;;  %v1550_v11 = vmax.f32 %v1424_v3, 0.0  ;;  %v1429_v13 = vpop.f32.mrb[11].mxu1 }
 0x197   :  { %4037 = vmatprep.subr.bf16.mxu1 %v5559_v14  ;;  %4283 = vmatprep.subr.bf16.mxu0 %v5562_v15  ;;  %v1625_v37 = vadd.f32 %v1624_v22, %v1623_v16  ;;  %v1571_v38 = vmax.f32 %v1383_v24, 0.0  ;;  %v1387_v39 = vadd.f32 %v1386_v32, %v282_v50  ;;  %v1428_v12 = vadd.f32 %v1427_v9, %v6716_v49  ;;  %v5578_v18 = vld [vmem:[#allocation5 + $0x3a8] ss:$16 sps:$4 sm:$0xff]   ;;  %v5583_v22 = vld [vmem:[#allocation5 + $0x3c4] ss:$16 sps:$4 sm:$0xff]  }
 0x198   :  { %v1619_v42 = vrot.slane %v1618_v28, 2  ;;  %v1581_v43 = vmax.f32 %v1385_v31, 0.0  ;;  %v1551_v15 = vmax.f32 %v1426_v5, 0.0  ;;  %v1430_v16 = vadd.f32 %v1429_v13, %v6719_v53  ;;  %v5586_v24 = vld [vmem:[#allocation5 + $0x3cc] ss:$16 sps:$4 sm:$0xff]  }
 0x199   :  { %v1626_v44 = vrot.slane %v1625_v37, 2  ;;  %v1582_v45 = vmax.f32 %v1387_v39, 0.0  ;;  %v5593_v13 = vld [vmem:[#allocation5 + $0x400] ss:$16 sps:$4 sm:$0xff]  }
 0x19a   :  { %4038 = vmatpush1.bf16.msra.mxu1 %v5557_v21  ;;  %4284 = vmatpush1.bf16.msra.mxu0 %v5560_v27  ;;  %v1620_v47 = vadd.f32 %v1619_v42, %v1618_v28  ;;  %v1693_v48 = vadd.f32 %v1581_v43, %v1570_v29  ;;  %v1561_v21 = vmax.f32 %v1428_v12, 0.0  ;;  %v1562_v27 = vmax.f32 %v1430_v16, 0.0 }
 0x19b   :  { %4039 = vmatprep.subr.bf16.mxu1 %v5565_v35  ;;  %4285 = vmatprep.subr.bf16.mxu0 %v5568_v36  ;;  %v1627_v50 = vadd.f32 %v1626_v44, %v1625_v37  ;;  %v1700_v52 = vadd.f32 %v1582_v45, %v1571_v38  ;;  %v1433_v35 = vpop.f32.mrb[12].mxu1  ;;  %v5581_v36 = vld [vmem:[#allocation5 + $0x3c0] ss:$16 sps:$4 sm:$0xff]   ;;  %v5584_v37 = vld [vmem:[#allocation5 + $0x3c8] ss:$16 sps:$4 sm:$0xff]  }
 0x19c   :  { %v1621_v54 = vrot.slane %v1620_v47, 1  ;;  %v1694_v55 = vrot.slane %v1693_v48, 4  ;;  %v1630_v31 = vadd.f32 %v1561_v21, %v1550_v11  ;;  %v1637_v34 = vadd.f32 %v1562_v27, %v1551_v15  ;;  %v1435_v43 = vpop.f32.mrb[13].mxu1  ;;  %v5589_v44 = vld [vmem:[#allocation5 + $0x3e4] ss:$16 sps:$4 sm:$0xff]  }
 0x19d   :  { %v1628_v56 = vrot.slane %v1627_v50, 1  ;;  %v1701_v57 = vrot.slane %v1700_v52, 4  ;;  %v1434_v42 = vadd.f32 %v1433_v35, %v6716_v49  ;;  %v5592_v45 = vld [vmem:[#allocation5 + $0x3ec] ss:$16 sps:$4 sm:$0xff]   ;;  %v5599_v27 = vld [vmem:[#allocation5 + $0x420] ss:$16 sps:$4 sm:$0xff]  }
 0x19e   :  { %4040 = vmatpush1.bf16.msra.mxu1 %v5563_v46  ;;  %4286 = vmatpush1.bf16.msra.mxu0 %v5566_v23  ;;  %v1622_v62 = vadd.f32 %v1621_v54, %v1620_v47  ;;  %v1695_v2 = vadd.f32 %v1694_v55, %v1693_v48  ;;  %v1631_v40 = vrot.slane %v1630_v31, 4  ;;  %v1638_v23 = vrot.slane %v1637_v34, 4 }
 0x19f   :  { %4041 = vmatprep.subr.bf16.mxu1 %v5571_v41  ;;  %4287 = vmatprep.subr.bf16.mxu0 %v5574_v51  ;;  %v1629_v60 = vadd.f32 %v1628_v56, %v1627_v50  ;;  %v1702_v8 = vadd.f32 %v1701_v57, %v1700_v52  ;;  %v1436_v48 = vadd.f32 %v1435_v43, %v6719_v53  ;;  %v1437_v41 = vpop.f32.mrb[14].mxu1  ;;  %v1572_v52 = vmax.f32 %v1434_v42, 0.0  ;;  %v5613_v43 = vld [vmem:[#allocation5 + $0x464] ss:$16 sps:$4 sm:$0xff]  }
 0x1a0   :  { %v1696_v10 = vrot.slane %v1695_v2, 2  ;;  %v1746_v19 = vpack.c.bf16 %v1622_v62, %v1622_v62  ;;  %v1632_v50 = vadd.f32 %v1631_v40, %v1630_v31  ;;  %v1438_v54 = vadd.f32 %v1437_v41, %v6716_v49  ;;  %v1439_v55 = vpop.f32.mrb[15].mxu1  ;;  %v5590_v62 = vld [vmem:[#allocation5 + $0x3e8] ss:$16 sps:$4 sm:$0xff]  }
 0x1a1   :  { %v1703_v14 = vrot.slane %v1702_v8, 2  ;;  %v1747_v28 = vpack.c.bf16 %v1629_v60, %v1629_v60  ;;  %v1639_v56 = vadd.f32 %v1638_v23, %v1637_v34  ;;  %v1573_v58 = vmax.f32 %v1436_v48, 0.0  ;;  %v5611_v48 = vld [vmem:[#allocation5 + $0x460] ss:$16 sps:$4 sm:$0xff]   ;;  %v5614_v41 = vld [vmem:[#allocation5 + $0x468] ss:$16 sps:$4 sm:$0xff]  }
 0x1a2   :  { %4042 = vmatpush1.bf16.msra.mxu1 %v5569_v61  ;;  %4288 = vmatpush1.bf16.msra.mxu0 %v5572_v59  ;;  %v1697_v20 = vadd.f32 %v1696_v10, %v1695_v2  ;;  %v2164_v38 = vunpack.c.l.b16 %v1746_v19  ;;  %v1440_v61 = vadd.f32 %v1439_v55, %v6719_v53  ;;  %v5587_v59 = vld [vmem:[#allocation5 + $0x3e0] ss:$16 sps:$4 sm:$0xff]   ;;  %v1633_v3 = vrot.slane %v1632_v50, 2  ;;  %v5604_v19 = vld [vmem:[#allocation5 + $0x42c] ss:$16 sps:$4 sm:$0xff]  }
 0x1a3   :  { %4043 = vmatprep.subr.bf16.mxu1 %v5577_v6  ;;  %4289 = vmatprep.subr.bf16.mxu0 %v5580_v7  ;;  %v1704_v25 = vadd.f32 %v1703_v14, %v1702_v8  ;;  %v2165_v47 = vunpack.c.l.b16 %v1747_v28  ;;  %v1583_v4 = vmax.f32 %v1438_v54, 0.0  ;;  %v5595_v6 = vld [vmem:[#allocation5 + $0x404] ss:$16 sps:$4 sm:$0xff]   ;;  %v5598_v7 = vld [vmem:[#allocation5 + $0x40c] ss:$16 sps:$4 sm:$0xff]   ;;  %v1640_v60 = vrot.slane %v1639_v56, 2 }
 0x1a4   :  { %v1698_v29 = vrot.slane %v1697_v20, 1  ;;  %v1584_v49 = vmax.f32 %v1440_v61, 0.0  ;;  %v1634_v5 = vadd.f32 %v1633_v3, %v1632_v50  ;;  %v5596_v14 = vld [vmem:[#allocation5 + $0x408] ss:$16 sps:$4 sm:$0xff]   ;;  %v5619_v54 = vld [vmem:[#allocation5 + $0x484] ss:$16 sps:$4 sm:$0xff]  }
 0x1a5   :  { %v1705_v32 = vrot.slane %v1704_v25, 1  ;;  %v1707_v9 = vadd.f32 %v1583_v4, %v1572_v52  ;;  %v1641_v53 = vadd.f32 %v1640_v60, %v1639_v56  ;;  %v5602_v28 = vld [vmem:[#allocation5 + $0x428] ss:$16 sps:$4 sm:$0xff]   ;;  %v256_v52 = vld [vmem:[#allocation2 + $0x8] sm:$0x7] }
 0x1a6   :  { %4044 = vmatpush1.bf16.msra.mxu1 %v5575_v17  ;;  %4290 = vmatpush1.bf16.msra.mxu0 %v5578_v18  ;;  %v1699_v39 = vadd.f32 %v1698_v29, %v1697_v20  ;;  %v1714_v12 = vadd.f32 %v1584_v49, %v1573_v58  ;;  %v1635_v15 = vrot.slane %v1634_v5, 1  ;;  %v2196_v17 = vpack.c.b16 %v6706_v33, %v6706_v33  ;;  %v5601_v18 = vld [vmem:[#allocation5 + $0x424] ss:$16 sps:$4 sm:$0xff]   ;;  %v5622_v55 = vld [vmem:[#allocation5 + $0x48c] ss:$16 sps:$4 sm:$0xff]  }
 0x1a7   :  { %4045 = vmatprep.subr.bf16.mxu1 %v5583_v22  ;;  %4291 = vmatprep.subr.bf16.mxu0 %v5586_v24  ;;  %v1706_v46 = vadd.f32 %v1705_v32, %v1704_v25  ;;  %v1708_v16 = vrot.slane %v1707_v9, 4  ;;  %v1642_v20 = vrot.slane %v1641_v53, 1  ;;  %v5607_v33 = vld [vmem:[#allocation5 + $0x444] ss:$16 sps:$4 sm:$0xff]   ;;  %v5610_v32 = vld [vmem:[#allocation5 + $0x44c] ss:$16 sps:$4 sm:$0xff]  }
 0x1a8   :  { %v1757_v51 = vpack.c.bf16 %v1699_v39, %v1699_v39  ;;  %v1715_v21 = vrot.slane %v1714_v12, 4  ;;  %v1636_v29 = vadd.f32 %v1635_v15, %v1634_v5  ;;  %v5608_v39 = vld [vmem:[#allocation5 + $0x448] ss:$16 sps:$4 sm:$0xff]   ;;  %v5628_v60 = vld [vmem:[#allocation5 + $0x4ac] ss:$16 sps:$4 sm:$0xff]  }
 0x1a9   :  { %v1758_v57 = vpack.c.bf16 %v1706_v46, %v1706_v46  ;;  %v1709_v24 = vadd.f32 %v1708_v16, %v1707_v9  ;;  %v1643_v34 = vadd.f32 %v1642_v20, %v1641_v53  ;;  %v5620_v3 = vld [vmem:[#allocation5 + $0x488] ss:$16 sps:$4 sm:$0xff]   ;;  %v5634_v15 = vld [vmem:[#allocation5 + $0x4cc] ss:$16 sps:$4 sm:$0xff]   ;;  %v5629_v20 = vld [vmem:[#allocation5 + $0x4c0] ss:$16 sps:$4 sm:$0xff]  }
 0x1aa   :  { %4046 = vmatpush1.bf16.msra.mxu1 %v5581_v36  ;;  %4292 = vmatpush1.bf16.msra.mxu0 %v5584_v37  ;;  %v2175_v2 = vunpack.c.l.b16 %v1757_v51  ;;  %v1716_v25 = vadd.f32 %v1715_v21, %v1714_v12  ;;  %v1748_v40 = vpack.c.bf16 %v1636_v29, %v1636_v29  ;;  %v5623_v12 = vld [vmem:[#allocation5 + $0x4a0] ss:$16 sps:$4 sm:$0xff]   ;;  %v5632_v21 = vld [vmem:[#allocation5 + $0x4c8] ss:$16 sps:$4 sm:$0xff]  }
 0x1ab   :  { %4047 = vmatprep.subr.bf16.mxu1 %v5589_v44  ;;  %4293 = vmatprep.subr.bf16.mxu0 %v5592_v45  ;;  %v2176_v8 = vunpack.c.l.b16 %v1758_v57  ;;  %v1710_v31 = vrot.slane %v1709_v24, 2  ;;  %v5616_v44 = vld [vmem:[#allocation5 + $0x46c] ss:$16 sps:$4 sm:$0xff]   ;;  %v1749_v46 = vpack.c.bf16 %v1643_v34, %v1643_v34  ;;  %v6746_v34 = vrot.slane %v256_v52, %v6688_v1 }
 0x1ac   :  { %v6730_v10 = vsel %vm2182_vm0, %v2175_v2, %v2164_v38  ;;  %v1717_v35 = vrot.slane %v1716_v25, 2  ;;  %v5605_v38 = vld [vmem:[#allocation5 + $0x440] ss:$16 sps:$4 sm:$0xff]   ;;  %v2166_v51 = vunpack.c.l.b16 %v1748_v40  ;;  %v5646_v40 = vld [vmem:[#allocation5 + $0x50c] ss:$16 sps:$4 sm:$0xff]  }
 0x1ad   :  { %v2188_v11 = vsel %vm2182_vm0, %v2176_v8, %v2165_v47  ;;  %v1711_v36 = vadd.f32 %v1710_v31, %v1709_v24  ;;  %v2167_v57 = vunpack.c.l.b16 %v1749_v46  ;;  %v5617_v2 = vld [vmem:[#allocation5 + $0x480] ss:$16 sps:$4 sm:$0xff]   ;;  %v5637_v24 = vld [vmem:[#allocation5 + $0x4e4] ss:$16 sps:$4 sm:$0xff]   ;;  %v6743_v31 = vrot.slane %v256_v52, %v6685_v0 }
 0x1ae   :  { %4048 = vmatpush1.bf16.msra.mxu1 %v5587_v59  ;;  %4294 = vmatpush1.bf16.msra.mxu0 %v5590_v62  ;;  %v2199_v22 = vpack.c.b16 %v2188_v11, %v2188_v11  ;;  %v1718_v37 = vadd.f32 %v1717_v35, %v1716_v25  ;;  %v302_v59 = vrot.slane %v256_v52, %v6695_v26  ;;  %v5640_v25 = vld [vmem:[#allocation5 + $0x4ec] ss:$16 sps:$4 sm:$0xff]   ;;  %v5644_v52 = vld [vmem:[#allocation5 + $0x508] ss:$16 sps:$4 sm:$0xff]  }
 0x1af   :  { %4058 = vmatprep.subr.bf16.mxu1 %v5595_v6  ;;  %4304 = vmatprep.subr.bf16.mxu0 %v5598_v7  ;;  %v1712_v42 = vrot.slane %v1711_v36, 1  ;;  %v5625_v7 = vld [vmem:[#allocation5 + $0x4a4] ss:$16 sps:$4 sm:$0xff]  }
 0x1b0   :  { %v1719_v45 = vrot.slane %v1718_v37, 1 }
 0x1b1   :  { %4050 = vmatmul.mubr.bf16.vlgmr.msra.gmra.mrb[24].mxu1 %v2196_v17  ;;  %4296 = vmatmul.mubr.bf16.vlgmr.msra.gmra.mrb[24].mxu0 %v2196_v17  ;;  %v1713_v23 = vadd.f32 %v1712_v42, %v1711_v36  ;;  %v5075_v61 = vpop.f32.mrb[16].mxu1 }
 0x1b2   :  { %4059 = vmatpush1.bf16.msra.mxu1 %v5593_v13  ;;  %4305 = vmatpush1.bf16.msra.mxu0 %v5596_v14  ;;  %v1720_v47 = vadd.f32 %v1719_v45, %v1718_v37  ;;  %v5076_v4 = vpop.f32.mrb[17].mxu1  ;;  %v5626_v13 = vld [vmem:[#allocation5 + $0x4a8] ss:$16 sps:$4 sm:$0xff]   ;;  %v5631_v14 = vld [vmem:[#allocation5 + $0x4c4] ss:$16 sps:$4 sm:$0xff]  }
 0x1b3   :  { %4060 = vmatprep.subr.bf16.mxu1 %v5601_v18  ;;  %4306 = vmatprep.subr.bf16.mxu0 %v5604_v19  ;;  %v1759_v50 = vpack.c.bf16 %v1713_v23, %v1713_v23  ;;  %v5077_v8 = vadd.f32 %v5076_v4, %v5075_v61  ;;  %v5078_v5 = vpop.f32.mrb[18].mxu1  ;;  %v5635_v37 = vld [vmem:[#allocation5 + $0x4e0] ss:$16 sps:$4 sm:$0xff]  }
 0x1b4   :  { %4090 = vmatprep.mubr.bf16.mxu1 %v2199_v22  ;;  %4336 = vmatprep.mubr.bf16.mxu0 %v2199_v22  ;;  %v1760_v56 = vpack.c.bf16 %v1720_v47, %v1720_v47  ;;  %v5079_v9 = vpop.f32.mrb[19].mxu1 }
 0x1b5   :  { %v2177_v58 = vunpack.c.l.b16 %v1759_v50  ;;  %v1530_v53 = vadd.f32 %v5077_v8, %v302_v59  ;;  %v5080_v11 = vadd.f32 %v5079_v9, %v5078_v5  ;;  %v5641_v50 = vld [vmem:[#allocation5 + $0x500] ss:$16 sps:$4 sm:$0xff]   ;;  %v5650_v5 = vld [vmem:[#allocation5 + $0x528] ss:$16 sps:$4 sm:$0xff]  }
 0x1b6   :  { %4061 = vmatpush1.bf16.msra.mxu1 %v5599_v27  ;;  %4307 = vmatpush1.bf16.msra.mxu0 %v5602_v28  ;;  %v2178_v62 = vunpack.c.l.b16 %v1760_v56  ;;  %v5647_v8 = vld [vmem:[#allocation5 + $0x520] ss:$16 sps:$4 sm:$0xff]  }
 0x1b7   :  { %4062 = vmatprep.subr.bf16.mxu1 %v5607_v33  ;;  %4308 = vmatprep.subr.bf16.mxu0 %v5610_v32  ;;  %v6737_v6 = vsel %vm2182_vm0, %v2177_v58, %v2166_v51  ;;  %v1554_v16 = vmax.f32 %v1530_v53, 0.0  ;;  %v1533_v17 = vadd.f32 %v5080_v11, %v302_v59  ;;  %v5652_v58 = vld [vmem:[#allocation5 + $0x52c] ss:$16 sps:$4 sm:$0xff]   ;;  %v5655_v53 = vld [vmem:[#allocation5 + $0x544] ss:$16 sps:$4 sm:$0xff]  }
 0x1b8   :  { %v6740_v49 = vsel %vm2182_vm0, %v2178_v62, %v2167_v57  ;;  %v5649_v57 = vld [vmem:[#allocation5 + $0x524] ss:$16 sps:$4 sm:$0xff]   ;;  %v5658_v11 = vld [vmem:[#allocation5 + $0x54c] ss:$16 sps:$4 sm:$0xff]  }
 0x1b9   :  { %v1565_v18 = vmax.f32 %v1533_v17, 0.0  ;;  %v5081_v19 = vpop.f32.mrb[20].mxu1 }
 0x1ba   :  { %4063 = vmatpush1.bf16.msra.mxu1 %v5605_v38  ;;  %4309 = vmatpush1.bf16.msra.mxu0 %v5608_v39  ;;  %v5082_v22 = vpop.f32.mrb[21].mxu1  ;;  %v5638_v38 = vld [vmem:[#allocation5 + $0x4e8] ss:$16 sps:$4 sm:$0xff]   ;;  %v5643_v39 = vld [vmem:[#allocation5 + $0x504] ss:$16 sps:$4 sm:$0xff]  }
 0x1bb   :  { %4064 = vmatprep.subr.bf16.mxu1 %v5613_v43  ;;  %4310 = vmatprep.subr.bf16.mxu0 %v5616_v44  ;;  %v1658_v27 = vadd.f32 %v1565_v18, %v1554_v16  ;;  %v5083_v28 = vadd.f32 %v5082_v22, %v5081_v19  ;;  %v5084_v29 = vpop.f32.mrb[22].mxu1 }
 0x1bc   :  { %v5085_v33 = vpop.f32.mrb[23].mxu1 }
 0x1bd   :  { %v1659_v32 = vrot.slane %v1658_v27, 4  ;;  %v1538_v35 = vadd.f32 %v5083_v28, %v302_v59  ;;  %v5086_v36 = vadd.f32 %v5085_v33, %v5084_v29 }
 0x1be   :  { %4065 = vmatpush1.bf16.msra.mxu1 %v5611_v48  ;;  %4311 = vmatpush1.bf16.msra.mxu0 %v5614_v41 }
 0x1bf   :  { %4066 = vmatprep.subr.bf16.mxu1 %v5619_v54  ;;  %4312 = vmatprep.subr.bf16.mxu0 %v5622_v55  ;;  %v1660_v43 = vadd.f32 %v1659_v32, %v1658_v27  ;;  %v1576_v44 = vmax.f32 %v1538_v35, 0.0  ;;  %v1541_v45 = vadd.f32 %v5086_v36, %v302_v59  ;;  %v5661_v32 = vld [vmem:[#allocation5 + $0x564] ss:$16 sps:$4 sm:$0xff]   ;;  %v5664_v35 = vld [vmem:[#allocation5 + $0x56c] ss:$16 sps:$4 sm:$0xff]  }
 0x1c1   :  { %v1661_v47 = vrot.slane %v1660_v43, 2  ;;  %v1587_v51 = vmax.f32 %v1541_v45, 0.0 }
 0x1c2   :  { %4067 = vmatpush1.bf16.msra.mxu1 %v5617_v2  ;;  %4313 = vmatpush1.bf16.msra.mxu0 %v5620_v3 }
 0x1c3   :  { %4068 = vmatprep.subr.bf16.mxu1 %v5625_v7  ;;  %4314 = vmatprep.subr.bf16.mxu0 %v5628_v60  ;;  %v1662_v61 = vadd.f32 %v1661_v47, %v1660_v43  ;;  %v1735_v2 = vadd.f32 %v1587_v51, %v1576_v44  ;;  %v5670_v51 = vld [vmem:[#allocation5 + $0x58c] ss:$16 sps:$4 sm:$0xff]  }
 0x1c5   :  { %v1663_v4 = vrot.slane %v1662_v61, 1  ;;  %v1736_v60 = vrot.slane %v1735_v2, 4 }
 0x1c6   :  { %4069 = vmatpush1.bf16.msra.mxu1 %v5623_v12  ;;  %4315 = vmatpush1.bf16.msra.mxu0 %v5626_v13 }
 0x1c7   :  { %4070 = vmatprep.subr.bf16.mxu1 %v5631_v14  ;;  %4316 = vmatprep.subr.bf16.mxu0 %v5634_v15  ;;  %v1737_v14 = vadd.f32 %v1736_v60, %v1735_v2  ;;  %v1664_v18 = vadd.f32 %v1663_v4, %v1662_v61  ;;  %v5668_v61 = vld [vmem:[#allocation5 + $0x588] ss:$16 sps:$4 sm:$0xff]   ;;  %v5676_v4 = vld [vmem:[#allocation5 + $0x5ac] ss:$16 sps:$4 sm:$0xff]  }
 0x1c9   :  { %v1752_v43 = vpack.c.bf16 %v1664_v18, %v1664_v18 }
 0x1ca   :  { %4071 = vmatpush1.bf16.msra.mxu1 %v5629_v20  ;;  %4317 = vmatpush1.bf16.msra.mxu0 %v5632_v21  ;;  %v1738_v20 = vrot.slane %v1737_v14, 2 }
 0x1cb   :  { %4072 = vmatprep.subr.bf16.mxu1 %v5637_v24  ;;  %4318 = vmatprep.subr.bf16.mxu0 %v5640_v25  ;;  %v1476_v42 = vpop.f32.mrb[16].mxu0  ;;  %v5653_v24 = vld [vmem:[#allocation5 + $0x540] ss:$16 sps:$4 sm:$0xff]   ;;  %v5656_v25 = vld [vmem:[#allocation5 + $0x548] ss:$16 sps:$4 sm:$0xff]  }
 0x1cc   :  { %v1477_v46 = vadd.f32 %v1476_v42, %v6743_v31  ;;  %v1478_v23 = vpop.f32.mrb[17].mxu0 }
 0x1cd   :  { %v1479_v48 = vadd.f32 %v1478_v23, %v6746_v34  ;;  %v1480_v41 = vpop.f32.mrb[18].mxu0  ;;  %v5662_v23 = vld [vmem:[#allocation5 + $0x568] ss:$16 sps:$4 sm:$0xff]  }
 0x1ce   :  { %4073 = vmatpush1.bf16.msra.mxu1 %v5635_v37  ;;  %4319 = vmatpush1.bf16.msra.mxu0 %v5638_v38  ;;  %v1552_v54 = vmax.f32 %v1477_v46, 0.0  ;;  %v1481_v55 = vadd.f32 %v1480_v41, %v6743_v31  ;;  %v1482_v56 = vpop.f32.mrb[19].mxu0  ;;  %v1739_v37 = vadd.f32 %v1738_v20, %v1737_v14  ;;  %v5659_v46 = vld [vmem:[#allocation5 + $0x560] ss:$16 sps:$4 sm:$0xff]   ;;  %v5667_v41 = vld [vmem:[#allocation5 + $0x584] ss:$16 sps:$4 sm:$0xff]  }
 0x1cf   :  { %4074 = vmatprep.subr.bf16.mxu1 %v5643_v39  ;;  %4320 = vmatprep.subr.bf16.mxu0 %v5646_v40  ;;  %v1553_v59 = vmax.f32 %v1479_v48, 0.0  ;;  %v1483_v62 = vadd.f32 %v1482_v56, %v6746_v34  ;;  %v5677_v20 = vld [vmem:[#allocation5 + $0x5c0] ss:$16 sps:$4 sm:$0xff]  }
 0x1d0   :  { %v1563_v3 = vmax.f32 %v1481_v55, 0.0  ;;  %v1740_v45 = vrot.slane %v1739_v37, 1 }
 0x1d1   :  { %v1564_v7 = vmax.f32 %v1483_v62, 0.0 }
 0x1d2   :  { %4075 = vmatpush1.bf16.msra.mxu1 %v5641_v50  ;;  %4321 = vmatpush1.bf16.msra.mxu0 %v5644_v52  ;;  %v1644_v9 = vadd.f32 %v1563_v3, %v1552_v54  ;;  %v1741_v52 = vadd.f32 %v1740_v45, %v1739_v37  ;;  %v5673_v3 = vld [vmem:[#allocation5 + $0x5a4] ss:$16 sps:$4 sm:$0xff]   ;;  %v5689_v45 = vld [vmem:[#allocation5 + $0x600] ss:$16 sps:$4 sm:$0xff]  }
 0x1d3   :  { %4076 = vmatprep.subr.bf16.mxu1 %v5649_v57  ;;  %4322 = vmatprep.subr.bf16.mxu0 %v5652_v58  ;;  %v1651_v12 = vadd.f32 %v1564_v7, %v1553_v59  ;;  %v1486_v13 = vpop.f32.mrb[20].mxu0  ;;  %v5665_v58 = vld [vmem:[#allocation5 + $0x580] ss:$16 sps:$4 sm:$0xff]  }
 0x1d4   :  { %v1645_v15 = vrot.slane %v1644_v9, 4  ;;  %v1487_v16 = vadd.f32 %v1486_v13, %v6743_v31  ;;  %v1488_v17 = vpop.f32.mrb[21].mxu0  ;;  %v1763_v57 = vpack.c.bf16 %v1741_v52, %v1741_v52  ;;  %v5703_v52 = vld [vmem:[#allocation5 + $0x644] ss:$16 sps:$4 sm:$0xff]  }
 0x1d5   :  { %v1652_v19 = vrot.slane %v1651_v12, 4  ;;  %v1489_v21 = vadd.f32 %v1488_v17, %v6746_v34  ;;  %v1490_v22 = vpop.f32.mrb[22].mxu0 }
 0x1d6   :  { %4077 = vmatpush1.bf16.msra.mxu1 %v5647_v8  ;;  %4323 = vmatpush1.bf16.msra.mxu0 %v5650_v5  ;;  %v1646_v27 = vadd.f32 %v1645_v15, %v1644_v9  ;;  %v1574_v28 = vmax.f32 %v1487_v16, 0.0  ;;  %v1491_v29 = vadd.f32 %v1490_v22, %v6743_v31  ;;  %v1492_v33 = vpop.f32.mrb[23].mxu0  ;;  %v2181_v7 = vunpack.c.l.b16 %v1763_v57  ;;  %v5679_v15 = vld [vmem:[#allocation5 + $0x5c4] ss:$16 sps:$4 sm:$0xff]   ;;  %v5682_v16 = vld [vmem:[#allocation5 + $0x5cc] ss:$16 sps:$4 sm:$0xff]  }
 0x1d7   :  { %4078 = vmatprep.subr.bf16.mxu1 %v5655_v53  ;;  %4324 = vmatprep.subr.bf16.mxu0 %v5658_v11  ;;  %v1653_v36 = vadd.f32 %v1652_v19, %v1651_v12  ;;  %v1575_v39 = vmax.f32 %v1489_v21, 0.0  ;;  %v1493_v42 = vadd.f32 %v1492_v33, %v6746_v34  ;;  %v2170_v34 = vunpack.c.l.b16 %v1752_v43  ;;  %v5671_v53 = vld [vmem:[#allocation5 + $0x5a0] ss:$16 sps:$4 sm:$0xff]   ;;  %v5674_v11 = vld [vmem:[#allocation5 + $0x5a8] ss:$16 sps:$4 sm:$0xff]  }
 0x1d8   :  { %v1647_v38 = vrot.slane %v1646_v27, 2  ;;  %v1585_v40 = vmax.f32 %v1491_v29, 0.0  ;;  %v5680_v21 = vld [vmem:[#allocation5 + $0x5c8] ss:$16 sps:$4 sm:$0xff]  }
 0x1d9   :  { %v1654_v44 = vrot.slane %v1653_v36, 2  ;;  %v1586_v48 = vmax.f32 %v1493_v42, 0.0  ;;  %v6757_v9 = vsel %vm2182_vm0, %v2181_v7, %v2170_v34  ;;  %v5694_v42 = vld [vmem:[#allocation5 + $0x60c] ss:$16 sps:$4 sm:$0xff]   ;;  %v5707_v34 = vld [vmem:[#allocation5 + $0x660] ss:$16 sps:$4 sm:$0xff]  }
 0x1da   :  { %4079 = vmatpush1.bf16.msra.mxu1 %v5653_v24  ;;  %4325 = vmatpush1.bf16.msra.mxu0 %v5656_v25  ;;  %v1648_v31 = vadd.f32 %v1647_v38, %v1646_v27  ;;  %v1721_v47 = vadd.f32 %v1585_v40, %v1574_v28  ;;  %v5685_v27 = vld [vmem:[#allocation5 + $0x5e4] ss:$16 sps:$4 sm:$0xff]   ;;  %v5688_v28 = vld [vmem:[#allocation5 + $0x5ec] ss:$16 sps:$4 sm:$0xff]   ;;  %v5710_v57 = vld [vmem:[#allocation5 + $0x668] ss:$16 sps:$4 sm:$0xff]  }
 0x1db   :  { %4080 = vmatprep.subr.bf16.mxu1 %v5661_v32  ;;  %4326 = vmatprep.subr.bf16.mxu0 %v5664_v35  ;;  %v1655_v50 = vadd.f32 %v1654_v44, %v1653_v36  ;;  %v1728_v56 = vadd.f32 %v1586_v48, %v1575_v39  ;;  %v5683_v35 = vld [vmem:[#allocation5 + $0x5e0] ss:$16 sps:$4 sm:$0xff]   ;;  %v5686_v36 = vld [vmem:[#allocation5 + $0x5e8] ss:$16 sps:$4 sm:$0xff]   ;;  %v5691_v40 = vld [vmem:[#allocation5 + $0x604] ss:$16 sps:$4 sm:$0xff]  }
 0x1dc   :  { %v1649_v54 = vrot.slane %v1648_v31, 1  ;;  %v1722_v55 = vrot.slane %v1721_v47, 4  ;;  %v5700_v48 = vld [vmem:[#allocation5 + $0x62c] ss:$16 sps:$4 sm:$0xff]   ;;  %v5722_v7 = vld [vmem:[#allocation5 + $0x6a8] ss:$16 sps:$4 sm:$0xff]  }
 0x1dd   :  { %v1656_v59 = vrot.slane %v1655_v50, 1  ;;  %v1729_v2 = vrot.slane %v1728_v56, 4 }
 0x1de   :  { %4081 = vmatpush1.bf16.msra.mxu1 %v5659_v46  ;;  %4327 = vmatpush1.bf16.msra.mxu0 %v5662_v23  ;;  %v1723_v62 = vadd.f32 %v1722_v55, %v1721_v47  ;;  %v1650_v60 = vadd.f32 %v1649_v54, %v1648_v31  ;;  %v5692_v46 = vld [vmem:[#allocation5 + $0x608] ss:$16 sps:$4 sm:$0xff]   ;;  %v2198_v31 = vpack.c.b16 %v6730_v10, %v6730_v10  ;;  %v5697_v47 = vld [vmem:[#allocation5 + $0x624] ss:$16 sps:$4 sm:$0xff]   ;;  %v5706_v54 = vld [vmem:[#allocation5 + $0x64c] ss:$16 sps:$4 sm:$0xff]  }
 0x1df   :  { %4082 = vmatprep.subr.bf16.mxu1 %v5667_v41  ;;  %4328 = vmatprep.subr.bf16.mxu0 %v5670_v51  ;;  %v1730_v5 = vadd.f32 %v1729_v2, %v1728_v56  ;;  %v1657_v12 = vadd.f32 %v1656_v59, %v1655_v50  ;;  %v2201_v41 = vpack.c.b16 %v6740_v49, %v6740_v49  ;;  %v5695_v51 = vld [vmem:[#allocation5 + $0x620] ss:$16 sps:$4 sm:$0xff]   ;;  %v5698_v50 = vld [vmem:[#allocation5 + $0x628] ss:$16 sps:$4 sm:$0xff]   ;;  %v5709_v56 = vld [vmem:[#allocation5 + $0x664] ss:$16 sps:$4 sm:$0xff]  }
 0x1e0   :  { %v1724_v8 = vrot.slane %v1723_v62, 2  ;;  %v1750_v17 = vpack.c.bf16 %v1650_v60, %v1650_v60  ;;  %v5701_v10 = vld [vmem:[#allocation5 + $0x640] ss:$16 sps:$4 sm:$0xff]   ;;  %v5704_v55 = vld [vmem:[#allocation5 + $0x648] ss:$16 sps:$4 sm:$0xff]  }
 0x1e1   :  { %v1731_v14 = vrot.slane %v1730_v5, 2  ;;  %v1751_v25 = vpack.c.bf16 %v1657_v12, %v1657_v12  ;;  %v5712_v49 = vld [vmem:[#allocation5 + $0x66c] ss:$16 sps:$4 sm:$0xff]   ;;  %v5713_v59 = vld [vmem:[#allocation5 + $0x680] ss:$16 sps:$4 sm:$0xff]  }
 0x1e2   :  { %4083 = vmatpush1.bf16.msra.mxu1 %v5665_v58  ;;  %4329 = vmatpush1.bf16.msra.mxu0 %v5668_v61  ;;  %v1725_v13 = vadd.f32 %v1724_v8, %v1723_v62  ;;  %v2168_v29 = vunpack.c.l.b16 %v1750_v17  ;;  %v5715_v58 = vld [vmem:[#allocation5 + $0x684] ss:$16 sps:$4 sm:$0xff]   ;;  %v5718_v61 = vld [vmem:[#allocation5 + $0x68c] ss:$16 sps:$4 sm:$0xff]   ;;  %v5716_v62 = vld [vmem:[#allocation5 + $0x688] ss:$16 sps:$4 sm:$0xff]  }
 0x1e3   :  { %4084 = vmatprep.subr.bf16.mxu1 %v5673_v3  ;;  %4330 = vmatprep.subr.bf16.mxu0 %v5676_v4  ;;  %v1732_v19 = vadd.f32 %v1731_v14, %v1730_v5  ;;  %v2169_v39 = vunpack.c.l.b16 %v1751_v25  ;;  %v5721_v2 = vld [vmem:[#allocation5 + $0x6a4] ss:$16 sps:$4 sm:$0xff]   ;;  %v5724_v3 = vld [vmem:[#allocation5 + $0x6ac] ss:$16 sps:$4 sm:$0xff]   ;;  %v5719_v4 = vld [vmem:[#allocation5 + $0x6a0] ss:$16 sps:$4 sm:$0xff]  }
 0x1e4   :  { %v1726_v18 = vrot.slane %v1725_v13, 1  ;;  %v5727_v60 = vld [vmem:[#allocation5 + $0x6c4] ss:$16 sps:$4 sm:$0xff]   ;;  %v5730_v8 = vld [vmem:[#allocation5 + $0x6cc] ss:$16 sps:$4 sm:$0xff]  }
 0x1e5   :  { %v1733_v24 = vrot.slane %v1732_v19, 1  ;;  %v5725_v5 = vld [vmem:[#allocation5 + $0x6c0] ss:$16 sps:$4 sm:$0xff]   ;;  %v5736_v12 = vld [vmem:[#allocation5 + $0x6ec] ss:$16 sps:$4 sm:$0xff]  }
 0x1e6   :  { %4085 = vmatpush1.bf16.msra.mxu1 %v5671_v53  ;;  %4331 = vmatpush1.bf16.msra.mxu0 %v5674_v11  ;;  %v1727_v22 = vadd.f32 %v1726_v18, %v1725_v13  ;;  %v5728_v53 = vld [vmem:[#allocation5 + $0x6c8] ss:$16 sps:$4 sm:$0xff]   ;;  %v5733_v11 = vld [vmem:[#allocation5 + $0x6e4] ss:$16 sps:$4 sm:$0xff]   ;;  %v5731_v13 = vld [vmem:[#allocation5 + $0x6e0] ss:$16 sps:$4 sm:$0xff]  }
 0x1e7   :  { %4086 = vmatprep.subr.bf16.mxu1 %v5679_v15  ;;  %4332 = vmatprep.subr.bf16.mxu0 %v5682_v16  ;;  %v1734_v32 = vadd.f32 %v1733_v24, %v1732_v19  ;;  %v5734_v14 = vld [vmem:[#allocation5 + $0x6e8] ss:$16 sps:$4 sm:$0xff]   ;;  %v5739_v15 = vld [vmem:[#allocation5 + $0x704] ss:$16 sps:$4 sm:$0xff]   ;;  %v5742_v16 = vld [vmem:[#allocation5 + $0x70c] ss:$16 sps:$4 sm:$0xff]  }
 0x1e8   :  { %v1761_v33 = vpack.c.bf16 %v1727_v22, %v1727_v22  ;;  %v5737_v17 = vld [vmem:[#allocation5 + $0x700] ss:$16 sps:$4 sm:$0xff]   ;;  %v5740_v18 = vld [vmem:[#allocation5 + $0x708] ss:$16 sps:$4 sm:$0xff]   ;;  %v5745_v19 = vld [vmem:[#allocation5 + $0x724] ss:$16 sps:$4 sm:$0xff]  }
 0x1e9   :  { %v1762_v38 = vpack.c.bf16 %v1734_v32, %v1734_v32  ;;  %v5746_v22 = vld [vmem:[#allocation5 + $0x728] ss:$16 sps:$4 sm:$0xff]   ;;  %v5751_v24 = vld [vmem:[#allocation5 + $0x744] ss:$16 sps:$4 sm:$0xff]   ;;  %v5754_v25 = vld [vmem:[#allocation5 + $0x74c] ss:$16 sps:$4 sm:$0xff]  }
 0x1ea   :  { %4087 = vmatpush1.bf16.msra.mxu1 %v5677_v20  ;;  %4333 = vmatpush1.bf16.msra.mxu0 %v5680_v21  ;;  %v2179_v37 = vunpack.c.l.b16 %v1761_v33  ;;  %v5748_v20 = vld [vmem:[#allocation5 + $0x72c] ss:$16 sps:$4 sm:$0xff]   ;;  %v5743_v21 = vld [vmem:[#allocation5 + $0x720] ss:$16 sps:$4 sm:$0xff]  }
 0x1eb   :  { %4088 = vmatprep.subr.bf16.mxu1 %v5685_v27  ;;  %4334 = vmatprep.subr.bf16.mxu0 %v5688_v28  ;;  %v2180_v43 = vunpack.c.l.b16 %v1762_v38  ;;  %v5749_v27 = vld [vmem:[#allocation5 + $0x740] ss:$16 sps:$4 sm:$0xff]   ;;  %v5752_v28 = vld [vmem:[#allocation5 + $0x748] ss:$16 sps:$4 sm:$0xff]   ;;  %v5760_v33 = vld [vmem:[#allocation5 + $0x76c] ss:$16 sps:$4 sm:$0xff]  }
 0x1ec   :  { %v6760_v44 = vsel %vm2182_vm0, %v2179_v37, %v2168_v29  ;;  %v5757_v29 = vld [vmem:[#allocation5 + $0x764] ss:$16 sps:$4 sm:$0xff]   ;;  %v5755_v32 = vld [vmem:[#allocation5 + $0x760] ss:$16 sps:$4 sm:$0xff]   ;;  %v5766_v37 = vld [vmem:[#allocation5 + $0x78c] ss:$16 sps:$4 sm:$0xff]  }
 0x1ed   :  { %v6763_v23 = vsel %vm2182_vm0, %v2180_v43, %v2169_v39  ;;  %v5761_v38 = vld [vmem:[#allocation5 + $0x780] ss:$16 sps:$4 sm:$0xff]   ;;  %v5764_v39 = vld [vmem:[#allocation5 + $0x788] ss:$16 sps:$4 sm:$0xff]  }
 0x1ee   :  { %4089 = vmatpush1.bf16.msra.mxu1 %v5683_v35  ;;  %4335 = vmatpush1.bf16.msra.mxu0 %v5686_v36  ;;  %v5758_v35 = vld [vmem:[#allocation5 + $0x768] ss:$16 sps:$4 sm:$0xff]   ;;  %v5763_v36 = vld [vmem:[#allocation5 + $0x784] ss:$16 sps:$4 sm:$0xff]   ;;  %v5767_v43 = vld [vmem:[#allocation5 + $0x7a0] ss:$16 sps:$4 sm:$0xff]  }
 0x1ef   :  { %4099 = vmatprep.subr.bf16.mxu1 %v5691_v40  ;;  %4345 = vmatprep.subr.bf16.mxu0 %v5694_v42  ;;  %v5769_v40 = vld [vmem:[#allocation5 + $0x7a4] ss:$16 sps:$4 sm:$0xff]   ;;  %v5772_v42 = vld [vmem:[#allocation5 + $0x7ac] ss:$16 sps:$4 sm:$0xff]  }
 0x1f1   :  { %4091 = vmatmul.mubr.bf16.vlgmr.msra.gmra.mrb[24].mxu1 %v2198_v31  ;;  %4337 = vmatmul.mubr.bf16.vlgmr.msra.gmra.mrb[24].mxu0 %v2198_v31  ;;  %v5778_v31 = vld [vmem:[#allocation5 + $0x7cc] ss:$16 sps:$4 sm:$0xff]  }
 0x1f2   :  { %4100 = vmatpush1.bf16.msra.mxu1 %v5689_v45  ;;  %4346 = vmatpush1.bf16.msra.mxu0 %v5692_v46  ;;  %v5770_v45 = vld [vmem:[#allocation5 + $0x7a8] ss:$16 sps:$4 sm:$0xff]   ;;  %v5775_v46 = vld [vmem:[#allocation5 + $0x7c4] ss:$16 sps:$4 sm:$0xff]  }
 0x1f3   :  { %4101 = vmatprep.subr.bf16.mxu1 %v5697_v47  ;;  %4347 = vmatprep.subr.bf16.mxu0 %v5700_v48  ;;  %v5773_v47 = vld [vmem:[#allocation5 + $0x7c0] ss:$16 sps:$4 sm:$0xff]   ;;  %v5776_v48 = vld [vmem:[#allocation5 + $0x7c8] ss:$16 sps:$4 sm:$0xff]  }
 0x1f4   :  { %4131 = vmatprep.mubr.bf16.mxu1 %v2201_v41  ;;  %4377 = vmatprep.mubr.bf16.mxu0 %v2201_v41  ;;  %v5781_v41 = vld [vmem:[#allocation5 + $0x7e4] ss:$16 sps:$4 sm:$0xff]  }
 0x1f6   :  { %4102 = vmatpush1.bf16.msra.mxu1 %v5695_v51  ;;  %4348 = vmatpush1.bf16.msra.mxu0 %v5698_v50  ;;  %v5784_v51 = vld [vmem:[#allocation5 + $0x7ec] ss:$16 sps:$4 sm:$0xff]   ;;  %v5779_v50 = vld [vmem:[#allocation5 + $0x7e0] ss:$16 sps:$4 sm:$0xff]  }
 0x1f7   :  { %4103 = vmatprep.subr.bf16.mxu1 %v5703_v52  ;;  %4349 = vmatprep.subr.bf16.mxu0 %v5706_v54  ;;  %v5782_v52 = vld [vmem:[#allocation5 + $0x7e8] ss:$16 sps:$4 sm:$0xff]   ;;  %v5787_v54 = vld [vmem:[#allocation5 + $0x804] ss:$16 sps:$4 sm:$0xff]  }
 0x1fa   :  { %4104 = vmatpush1.bf16.msra.mxu1 %v5701_v10  ;;  %4350 = vmatpush1.bf16.msra.mxu0 %v5704_v55  ;;  %v5790_v10 = vld [vmem:[#allocation5 + $0x80c] ss:$16 sps:$4 sm:$0xff]   ;;  %v5785_v55 = vld [vmem:[#allocation5 + $0x800] ss:$16 sps:$4 sm:$0xff]  }
 0x1fb   :  { %4105 = vmatprep.subr.bf16.mxu1 %v5709_v56  ;;  %4351 = vmatprep.subr.bf16.mxu0 %v5712_v49  ;;  %v2200_v56 = vpack.c.b16 %v6737_v6, %v6737_v6  ;;  %v5788_v49 = vld [vmem:[#allocation5 + $0x808] ss:$16 sps:$4 sm:$0xff]   ;;  %v5802_v6 = vld [vmem:[#allocation5 + $0x84c] ss:$16 sps:$4 sm:$0xff]  }
 0x1fe   :  { %4106 = vmatpush1.bf16.msra.mxu1 %v5707_v34  ;;  %4352 = vmatpush1.bf16.msra.mxu0 %v5710_v57  ;;  %v2203_v34 = vpack.c.b16 %v6763_v23, %v6763_v23  ;;  %v5793_v57 = vld [vmem:[#allocation5 + $0x824] ss:$16 sps:$4 sm:$0xff]  }
 0x1ff   :  { %4107 = vmatprep.subr.bf16.mxu1 %v5715_v58  ;;  %4353 = vmatprep.subr.bf16.mxu0 %v5718_v61  ;;  %v5796_v58 = vld [vmem:[#allocation5 + $0x82c] ss:$16 sps:$4 sm:$0xff]   ;;  %v5791_v61 = vld [vmem:[#allocation5 + $0x820] ss:$16 sps:$4 sm:$0xff]   ;;  %v5805_v23 = vld [vmem:[#allocation5 + $0x864] ss:$16 sps:$4 sm:$0xff]  }
 0x202   :  { %4108 = vmatpush1.bf16.msra.mxu1 %v5713_v59  ;;  %4354 = vmatpush1.bf16.msra.mxu0 %v5716_v62  ;;  %v5794_v59 = vld [vmem:[#allocation5 + $0x828] ss:$16 sps:$4 sm:$0xff]   ;;  %v5799_v62 = vld [vmem:[#allocation5 + $0x844] ss:$16 sps:$4 sm:$0xff]  }
 0x203   :  { %4109 = vmatprep.subr.bf16.mxu1 %v5721_v2  ;;  %4355 = vmatprep.subr.bf16.mxu0 %v5724_v3  ;;  %v5797_v2 = vld [vmem:[#allocation5 + $0x840] ss:$16 sps:$4 sm:$0xff]   ;;  %v5800_v3 = vld [vmem:[#allocation5 + $0x848] ss:$16 sps:$4 sm:$0xff]  }
 0x206   :  { %4110 = vmatpush1.bf16.msra.mxu1 %v5719_v4  ;;  %4356 = vmatpush1.bf16.msra.mxu0 %v5722_v7  ;;  %v5808_v4 = vld [vmem:[#allocation5 + $0x86c] ss:$16 sps:$4 sm:$0xff]   ;;  %v5803_v7 = vld [vmem:[#allocation5 + $0x860] ss:$16 sps:$4 sm:$0xff]  }
 0x207   :  { %4111 = vmatprep.subr.bf16.mxu1 %v5727_v60  ;;  %4357 = vmatprep.subr.bf16.mxu0 %v5730_v8  ;;  %v5806_v60 = vld [vmem:[#allocation5 + $0x868] ss:$16 sps:$4 sm:$0xff]   ;;  %v5811_v8 = vld [vmem:[#allocation5 + $0x884] ss:$16 sps:$4 sm:$0xff]  }
 0x20a   :  { %4112 = vmatpush1.bf16.msra.mxu1 %v5725_v5  ;;  %4358 = vmatpush1.bf16.msra.mxu0 %v5728_v53  ;;  %v5814_v5 = vld [vmem:[#allocation5 + $0x88c] ss:$16 sps:$4 sm:$0xff]   ;;  %v5809_v53 = vld [vmem:[#allocation5 + $0x880] ss:$16 sps:$4 sm:$0xff]  }
 0x20b   :  { %4113 = vmatprep.subr.bf16.mxu1 %v5733_v11  ;;  %4359 = vmatprep.subr.bf16.mxu0 %v5736_v12  ;;  %v5812_v11 = vld [vmem:[#allocation5 + $0x888] ss:$16 sps:$4 sm:$0xff]   ;;  %v5817_v12 = vld [vmem:[#allocation5 + $0x8a4] ss:$16 sps:$4 sm:$0xff]  }
 0x20e   :  { %4114 = vmatpush1.bf16.msra.mxu1 %v5731_v13  ;;  %4360 = vmatpush1.bf16.msra.mxu0 %v5734_v14  ;;  %v5820_v13 = vld [vmem:[#allocation5 + $0x8ac] ss:$16 sps:$4 sm:$0xff]   ;;  %v5815_v14 = vld [vmem:[#allocation5 + $0x8a0] ss:$16 sps:$4 sm:$0xff]  }
 0x20f   :  { %4115 = vmatprep.subr.bf16.mxu1 %v5739_v15  ;;  %4361 = vmatprep.subr.bf16.mxu0 %v5742_v16  ;;  %v5818_v15 = vld [vmem:[#allocation5 + $0x8a8] ss:$16 sps:$4 sm:$0xff]   ;;  %v5823_v16 = vld [vmem:[#allocation5 + $0x8c4] ss:$16 sps:$4 sm:$0xff]  }
 0x212   :  { %4116 = vmatpush1.bf16.msra.mxu1 %v5737_v17  ;;  %4362 = vmatpush1.bf16.msra.mxu0 %v5740_v18  ;;  %v5826_v17 = vld [vmem:[#allocation5 + $0x8cc] ss:$16 sps:$4 sm:$0xff]   ;;  %v5821_v18 = vld [vmem:[#allocation5 + $0x8c0] ss:$16 sps:$4 sm:$0xff]  }
 0x213   :  { %4117 = vmatprep.subr.bf16.mxu1 %v5745_v19  ;;  %4363 = vmatprep.subr.bf16.mxu0 %v5748_v20  ;;  %v5824_v19 = vld [vmem:[#allocation5 + $0x8c8] ss:$16 sps:$4 sm:$0xff]   ;;  %v5829_v20 = vld [vmem:[#allocation5 + $0x8e4] ss:$16 sps:$4 sm:$0xff]  }
 0x216   :  { %4118 = vmatpush1.bf16.msra.mxu1 %v5743_v21  ;;  %4364 = vmatpush1.bf16.msra.mxu0 %v5746_v22  ;;  %v5832_v21 = vld [vmem:[#allocation5 + $0x8ec] ss:$16 sps:$4 sm:$0xff]   ;;  %v5827_v22 = vld [vmem:[#allocation5 + $0x8e0] ss:$16 sps:$4 sm:$0xff]  }
 0x217   :  { %4119 = vmatprep.subr.bf16.mxu1 %v5751_v24  ;;  %4365 = vmatprep.subr.bf16.mxu0 %v5754_v25  ;;  %v5830_v24 = vld [vmem:[#allocation5 + $0x8e8] ss:$16 sps:$4 sm:$0xff]   ;;  %v5835_v25 = vld [vmem:[#allocation5 + $0x904] ss:$16 sps:$4 sm:$0xff]  }
 0x21a   :  { %4120 = vmatpush1.bf16.msra.mxu1 %v5749_v27  ;;  %4366 = vmatpush1.bf16.msra.mxu0 %v5752_v28  ;;  %v5838_v27 = vld [vmem:[#allocation5 + $0x90c] ss:$16 sps:$4 sm:$0xff]   ;;  %v5833_v28 = vld [vmem:[#allocation5 + $0x900] ss:$16 sps:$4 sm:$0xff]  }
 0x21b   :  { %4121 = vmatprep.subr.bf16.mxu1 %v5757_v29  ;;  %4367 = vmatprep.subr.bf16.mxu0 %v5760_v33  ;;  %v5836_v29 = vld [vmem:[#allocation5 + $0x908] ss:$16 sps:$4 sm:$0xff]   ;;  %v5841_v33 = vld [vmem:[#allocation5 + $0x924] ss:$16 sps:$4 sm:$0xff]  }
 0x21e   :  { %4122 = vmatpush1.bf16.msra.mxu1 %v5755_v32  ;;  %4368 = vmatpush1.bf16.msra.mxu0 %v5758_v35  ;;  %v5844_v32 = vld [vmem:[#allocation5 + $0x92c] ss:$16 sps:$4 sm:$0xff]   ;;  %v5839_v35 = vld [vmem:[#allocation5 + $0x920] ss:$16 sps:$4 sm:$0xff]  }
 0x21f   :  { %4123 = vmatprep.subr.bf16.mxu1 %v5763_v36  ;;  %4369 = vmatprep.subr.bf16.mxu0 %v5766_v37  ;;  %v5842_v36 = vld [vmem:[#allocation5 + $0x928] ss:$16 sps:$4 sm:$0xff]   ;;  %v5847_v37 = vld [vmem:[#allocation5 + $0x944] ss:$16 sps:$4 sm:$0xff]  }
 0x222   :  { %4124 = vmatpush1.bf16.msra.mxu1 %v5761_v38  ;;  %4370 = vmatpush1.bf16.msra.mxu0 %v5764_v39  ;;  %v5850_v38 = vld [vmem:[#allocation5 + $0x94c] ss:$16 sps:$4 sm:$0xff]   ;;  %v5845_v39 = vld [vmem:[#allocation5 + $0x940] ss:$16 sps:$4 sm:$0xff]  }
 0x223   :  { %4125 = vmatprep.subr.bf16.mxu1 %v5769_v40  ;;  %4371 = vmatprep.subr.bf16.mxu0 %v5772_v42  ;;  %v5848_v40 = vld [vmem:[#allocation5 + $0x948] ss:$16 sps:$4 sm:$0xff]   ;;  %v5853_v42 = vld [vmem:[#allocation5 + $0x964] ss:$16 sps:$4 sm:$0xff]  }
 0x226   :  { %4126 = vmatpush1.bf16.msra.mxu1 %v5767_v43  ;;  %4372 = vmatpush1.bf16.msra.mxu0 %v5770_v45  ;;  %v5856_v43 = vld [vmem:[#allocation5 + $0x96c] ss:$16 sps:$4 sm:$0xff]   ;;  %v5851_v45 = vld [vmem:[#allocation5 + $0x960] ss:$16 sps:$4 sm:$0xff]  }
 0x227   :  { %4127 = vmatprep.subr.bf16.mxu1 %v5775_v46  ;;  %4373 = vmatprep.subr.bf16.mxu0 %v5778_v31  ;;  %v5854_v46 = vld [vmem:[#allocation5 + $0x968] ss:$16 sps:$4 sm:$0xff]   ;;  %v5859_v31 = vld [vmem:[#allocation5 + $0x984] ss:$16 sps:$4 sm:$0xff]  }
 0x22a   :  { %4128 = vmatpush1.bf16.msra.mxu1 %v5773_v47  ;;  %4374 = vmatpush1.bf16.msra.mxu0 %v5776_v48  ;;  %v5862_v47 = vld [vmem:[#allocation5 + $0x98c] ss:$16 sps:$4 sm:$0xff]   ;;  %v5857_v48 = vld [vmem:[#allocation5 + $0x980] ss:$16 sps:$4 sm:$0xff]  }
 0x22b   :  { %4129 = vmatprep.subr.bf16.mxu1 %v5781_v41  ;;  %4375 = vmatprep.subr.bf16.mxu0 %v5784_v51  ;;  %v5860_v41 = vld [vmem:[#allocation5 + $0x988] ss:$16 sps:$4 sm:$0xff]   ;;  %v5865_v51 = vld [vmem:[#allocation5 + $0x9a4] ss:$16 sps:$4 sm:$0xff]  }
 0x22e   :  { %4130 = vmatpush1.bf16.msra.mxu1 %v5779_v50  ;;  %4376 = vmatpush1.bf16.msra.mxu0 %v5782_v52  ;;  %v5868_v50 = vld [vmem:[#allocation5 + $0x9ac] ss:$16 sps:$4 sm:$0xff]   ;;  %v5863_v52 = vld [vmem:[#allocation5 + $0x9a0] ss:$16 sps:$4 sm:$0xff]  }
 0x22f   :  { %4140 = vmatprep.subr.bf16.mxu1 %v5787_v54  ;;  %4386 = vmatprep.subr.bf16.mxu0 %v5790_v10  ;;  %v5866_v54 = vld [vmem:[#allocation5 + $0x9a8] ss:$16 sps:$4 sm:$0xff]   ;;  %v5871_v10 = vld [vmem:[#allocation5 + $0x9c4] ss:$16 sps:$4 sm:$0xff]  }
 0x231   :  { %4132 = vmatmul.mubr.bf16.vlgmr.msra.gmra.mrb[24].mxu1 %v2200_v56  ;;  %4378 = vmatmul.mubr.bf16.vlgmr.msra.gmra.mrb[24].mxu0 %v2200_v56  ;;  %v5869_v56 = vld [vmem:[#allocation5 + $0x9c0] ss:$16 sps:$4 sm:$0xff]  }
 0x232   :  { %4141 = vmatpush1.bf16.msra.mxu1 %v5785_v55  ;;  %4172 = vmatprep.mubr.bf16.mxu1 %v2203_v34  ;;  %v5874_v55 = vld [vmem:[#allocation5 + $0x9cc] ss:$16 sps:$4 sm:$0xff]  }
 0x233   :  { %4387 = vmatpush1.bf16.msra.mxu0 %v5788_v49  ;;  %4418 = vmatprep.mubr.bf16.mxu0 %v2203_v34  ;;  %v5872_v49 = vld [vmem:[#allocation5 + $0x9c8] ss:$16 sps:$4 sm:$0xff]   ;;  %v5877_v34 = vld [vmem:[#allocation5 + $0x9e4] ss:$16 sps:$4 sm:$0xff]  }
 0x234   :  { %4142 = vmatprep.subr.bf16.mxu1 %v5793_v57  ;;  %4388 = vmatprep.subr.bf16.mxu0 %v5796_v58  ;;  %v5880_v57 = vld [vmem:[#allocation5 + $0x9ec] ss:$16 sps:$4 sm:$0xff]   ;;  %v5875_v58 = vld [vmem:[#allocation5 + $0x9e0] ss:$16 sps:$4 sm:$0xff]  }
 0x236   :  { %4143 = vmatpush1.bf16.msra.mxu1 %v5791_v61  ;;  %v5878_v61 = vld [vmem:[#allocation5 + $0x9e8] ss:$16 sps:$4 sm:$0xff]  }
 0x237   :  { %4389 = vmatpush1.bf16.msra.mxu0 %v5794_v59  ;;  %4144 = vmatprep.subr.bf16.mxu1 %v5799_v62  ;;  %v5883_v59 = vld [vmem:[#allocation5 + $0xa04] ss:$16 sps:$4 sm:$0xff]   ;;  %v5886_v62 = vld [vmem:[#allocation5 + $0xa0c] ss:$16 sps:$4 sm:$0xff]  }
 0x238   :  { %4390 = vmatprep.subr.bf16.mxu0 %v5802_v6  ;;  %v5881_v6 = vld [vmem:[#allocation5 + $0xa00] ss:$16 sps:$4 sm:$0xff]  }
 0x23a   :  { %4145 = vmatpush1.bf16.msra.mxu1 %v5797_v2  ;;  %v2202_v2 = vpack.c.b16 %v6760_v44, %v6760_v44  ;;  %v5893_v44 = vld [vmem:[#allocation5 + $0xa40] ss:$16 sps:$4 sm:$0xff]  }
 0x23b   :  { %4391 = vmatpush1.bf16.msra.mxu0 %v5800_v3  ;;  %4146 = vmatprep.subr.bf16.mxu1 %v5805_v23  ;;  %v5884_v3 = vld [vmem:[#allocation5 + $0xa08] ss:$16 sps:$4 sm:$0xff]   ;;  %v5889_v23 = vld [vmem:[#allocation5 + $0xa24] ss:$16 sps:$4 sm:$0xff]  }
 0x23c   :  { %4392 = vmatprep.subr.bf16.mxu0 %v5808_v4  ;;  %v5892_v4 = vld [vmem:[#allocation5 + $0xa2c] ss:$16 sps:$4 sm:$0xff]  }
 0x23e   :  { %4147 = vmatpush1.bf16.msra.mxu1 %v5803_v7  ;;  %v5887_v7 = vld [vmem:[#allocation5 + $0xa20] ss:$16 sps:$4 sm:$0xff]  }
 0x23f   :  { %4393 = vmatpush1.bf16.msra.mxu0 %v5806_v60  ;;  %4148 = vmatprep.subr.bf16.mxu1 %v5811_v8  ;;  %v5890_v60 = vld [vmem:[#allocation5 + $0xa28] ss:$16 sps:$4 sm:$0xff]   ;;  %v5895_v8 = vld [vmem:[#allocation5 + $0xa44] ss:$16 sps:$4 sm:$0xff]  }
 0x240   :  { %4394 = vmatprep.subr.bf16.mxu0 %v5814_v5  ;;  %v5898_v5 = vld [vmem:[#allocation5 + $0xa4c] ss:$16 sps:$4 sm:$0xff]  }
 0x242   :  { %4149 = vmatpush1.bf16.msra.mxu1 %v5809_v53  ;;  %v6033_v53 = vmov 0  }
 0x243   :  { %4395 = vmatpush1.bf16.msra.mxu0 %v5812_v11  ;;  %4150 = vmatprep.subr.bf16.mxu1 %v5817_v12  ;;  %v5896_v11 = vld [vmem:[#allocation5 + $0xa48] ss:$16 sps:$4 sm:$0xff]   ;;  %v5901_v12 = vld [vmem:[#allocation5 + $0xa64] ss:$16 sps:$4 sm:$0xff]  }
 0x244   :  { %4396 = vmatprep.subr.bf16.mxu0 %v5820_v13  ;;  %v5904_v13 = vld [vmem:[#allocation5 + $0xa6c] ss:$16 sps:$4 sm:$0xff]  }
 0x246   :  { %4151 = vmatpush1.bf16.msra.mxu1 %v5815_v14  ;;  %v5899_v14 = vld [vmem:[#allocation5 + $0xa60] ss:$16 sps:$4 sm:$0xff]  }
 0x247   :  { %4397 = vmatpush1.bf16.msra.mxu0 %v5818_v15  ;;  %4152 = vmatprep.subr.bf16.mxu1 %v5823_v16  ;;  %v5902_v15 = vld [vmem:[#allocation5 + $0xa68] ss:$16 sps:$4 sm:$0xff]   ;;  %v5907_v16 = vld [vmem:[#allocation5 + $0xa84] ss:$16 sps:$4 sm:$0xff]  }
 0x248   :  { %4398 = vmatprep.subr.bf16.mxu0 %v5826_v17  ;;  %v5910_v17 = vld [vmem:[#allocation5 + $0xa8c] ss:$16 sps:$4 sm:$0xff]  }
 0x24a   :  { %4153 = vmatpush1.bf16.msra.mxu1 %v5821_v18  ;;  %v5905_v18 = vld [vmem:[#allocation5 + $0xa80] ss:$16 sps:$4 sm:$0xff]  }
 0x24b   :  { %4399 = vmatpush1.bf16.msra.mxu0 %v5824_v19  ;;  %4154 = vmatprep.subr.bf16.mxu1 %v5829_v20  ;;  %v5908_v19 = vld [vmem:[#allocation5 + $0xa88] ss:$16 sps:$4 sm:$0xff]   ;;  %v5913_v20 = vld [vmem:[#allocation5 + $0xaa4] ss:$16 sps:$4 sm:$0xff]  }
 0x24c   :  { %4400 = vmatprep.subr.bf16.mxu0 %v5832_v21  ;;  %v5916_v21 = vld [vmem:[#allocation5 + $0xaac] ss:$16 sps:$4 sm:$0xff]  }
 0x24e   :  { %4155 = vmatpush1.bf16.msra.mxu1 %v5827_v22  ;;  %v5911_v22 = vld [vmem:[#allocation5 + $0xaa0] ss:$16 sps:$4 sm:$0xff]  }
 0x24f   :  { %4401 = vmatpush1.bf16.msra.mxu0 %v5830_v24  ;;  %4156 = vmatprep.subr.bf16.mxu1 %v5835_v25  ;;  %v5914_v24 = vld [vmem:[#allocation5 + $0xaa8] ss:$16 sps:$4 sm:$0xff]   ;;  %v5919_v25 = vld [vmem:[#allocation5 + $0xac4] ss:$16 sps:$4 sm:$0xff]  }
 0x250   :  { %4402 = vmatprep.subr.bf16.mxu0 %v5838_v27  ;;  %v5922_v27 = vld [vmem:[#allocation5 + $0xacc] ss:$16 sps:$4 sm:$0xff]  }
 0x252   :  { %4157 = vmatpush1.bf16.msra.mxu1 %v5833_v28  ;;  %v5917_v28 = vld [vmem:[#allocation5 + $0xac0] ss:$16 sps:$4 sm:$0xff]  }
 0x253   :  { %4403 = vmatpush1.bf16.msra.mxu0 %v5836_v29  ;;  %4158 = vmatprep.subr.bf16.mxu1 %v5841_v33  ;;  %v5920_v29 = vld [vmem:[#allocation5 + $0xac8] ss:$16 sps:$4 sm:$0xff]   ;;  %v5925_v33 = vld [vmem:[#allocation5 + $0xae4] ss:$16 sps:$4 sm:$0xff]  }
 0x254   :  { %4404 = vmatprep.subr.bf16.mxu0 %v5844_v32  ;;  %v5928_v32 = vld [vmem:[#allocation5 + $0xaec] ss:$16 sps:$4 sm:$0xff]  }
 0x256   :  { %4159 = vmatpush1.bf16.msra.mxu1 %v5839_v35  ;;  %v5923_v35 = vld [vmem:[#allocation5 + $0xae0] ss:$16 sps:$4 sm:$0xff]  }
 0x257   :  { %4405 = vmatpush1.bf16.msra.mxu0 %v5842_v36  ;;  %4160 = vmatprep.subr.bf16.mxu1 %v5847_v37  ;;  %v5926_v36 = vld [vmem:[#allocation5 + $0xae8] ss:$16 sps:$4 sm:$0xff]   ;;  %v2204_v37 = vpack.c.b16 %v6757_v9, %v6757_v9 }
 0x258   :  { %4406 = vmatprep.subr.bf16.mxu0 %v5850_v38  ;;  %v2116_v38 = vld [vmem:[#allocation7] sm:$0xf] }
 0x25a   :  { %4161 = vmatpush1.bf16.msra.mxu1 %v5845_v39  ;;  %v2121_v39 = vrot.slane %v2116_v38, %v6685_v0 }
 0x25b   :  { %4407 = vmatpush1.bf16.msra.mxu0 %v5848_v40  ;;  %4162 = vmatprep.subr.bf16.mxu1 %v5853_v42  ;;  %v2129_v40 = vrot.slane %v2116_v38, %v6695_v26  ;;  %v2125_v42 = vrot.slane %v2116_v38, %v6688_v1 }
 0x25c   :  { %4408 = vmatprep.subr.bf16.mxu0 %v5856_v43  ;;  %v2133_v43 = vrot.slane %v2116_v38, %v273_v30 }
 0x25e   :  { %4163 = vmatpush1.bf16.msra.mxu1 %v5851_v45 }
 0x25f   :  { %4409 = vmatpush1.bf16.msra.mxu0 %v5854_v46  ;;  %4164 = vmatprep.subr.bf16.mxu1 %v5859_v31 }
 0x260   :  { %4410 = vmatprep.subr.bf16.mxu0 %v5862_v47 }
 0x262   :  { %4165 = vmatpush1.bf16.msra.mxu1 %v5857_v48 }
 0x263   :  { %4411 = vmatpush1.bf16.msra.mxu0 %v5860_v41  ;;  %4166 = vmatprep.subr.bf16.mxu1 %v5865_v51 }
 0x264   :  { %4412 = vmatprep.subr.bf16.mxu0 %v5868_v50 }
 0x266   :  { %4167 = vmatpush1.bf16.msra.mxu1 %v5863_v52 }
 0x267   :  { %4413 = vmatpush1.bf16.msra.mxu0 %v5866_v54  ;;  %4168 = vmatprep.subr.bf16.mxu1 %v5871_v10 }
 0x268   :  { %4414 = vmatprep.subr.bf16.mxu0 %v5874_v55 }
 0x26a   :  { %4169 = vmatpush1.bf16.msra.mxu1 %v5869_v56 }
 0x26b   :  { %4415 = vmatpush1.bf16.msra.mxu0 %v5872_v49  ;;  %4170 = vmatprep.subr.bf16.mxu1 %v5877_v34 }
 0x26c   :  { %4416 = vmatprep.subr.bf16.mxu0 %v5880_v57 }
 0x26e   :  { %4171 = vmatpush1.bf16.msra.mxu1 %v5875_v58 }
 0x26f   :  { %4417 = vmatpush1.bf16.msra.mxu0 %v5878_v61  ;;  %4181 = vmatprep.subr.bf16.mxu1 %v5883_v59 }
 0x270   :  { %4427 = vmatprep.subr.bf16.mxu0 %v5886_v62 }
 0x271   :  { %4173 = vmatmul.mubr.bf16.vlgmr.msra.gmra.mrb[24].mxu1 %v2202_v2 }
 0x272   :  { %4419 = vmatmul.mubr.bf16.vlgmr.msra.gmra.mrb[24].mxu0 %v2202_v2  ;;  %4182 = vmatpush1.bf16.msra.mxu1 %v5881_v6  ;;  %v6034_v6 = vmov 1983009808  }
 0x273   :  { %4428 = vmatpush1.bf16.msra.mxu0 %v5884_v3  ;;  %4183 = vmatprep.subr.bf16.mxu1 %v5889_v23  ;;  %v4495_v2 = vunpack.c.l.s4 %v6034_v6 }
 0x274   :  { %4429 = vmatprep.subr.bf16.mxu0 %v5892_v4  ;;  %4213 = vmatprep.mubr.bf16.mxu1 %v6033_v53 }
 0x275   :  { %4459 = vmatprep.mubr.bf16.mxu0 %v6033_v53  ;;  %v4496_v3 = vunpack.c.0.s8 %v4495_v2 }
 0x276   :  { %4184 = vmatpush1.bf16.msra.mxu1 %v5887_v7 }
 0x277   :  { %4430 = vmatpush1.bf16.msra.mxu0 %v5890_v60  ;;  %4185 = vmatprep.subr.bf16.mxu1 %v5895_v8  ;;  %v4499_v4 = vsub.s32 %v4496_v3, %v6680_v63 }
 0x278   :  { %4431 = vmatprep.subr.bf16.mxu0 %v5898_v5 }
 0x27a   :  { %4186 = vmatpush1.bf16.msra.mxu1 %v5893_v44 }
 0x27b   :  { %4432 = vmatpush1.bf16.msra.mxu0 %v5896_v11  ;;  %4187 = vmatprep.subr.bf16.mxu1 %v5901_v12 }
 0x27c   :  { %4433 = vmatprep.subr.bf16.mxu0 %v5904_v13 }
 0x27e   :  { %4188 = vmatpush1.bf16.msra.mxu1 %v5899_v14 }
 0x27f   :  { %4434 = vmatpush1.bf16.msra.mxu0 %v5902_v15  ;;  %4189 = vmatprep.subr.bf16.mxu1 %v5907_v16 }
 0x280   :  { %4435 = vmatprep.subr.bf16.mxu0 %v5910_v17 }
 0x282   :  { %4190 = vmatpush1.bf16.msra.mxu1 %v5905_v18 }
 0x283   :  { %4436 = vmatpush1.bf16.msra.mxu0 %v5908_v19  ;;  %4191 = vmatprep.subr.bf16.mxu1 %v5913_v20 }
 0x284   :  { %4437 = vmatprep.subr.bf16.mxu0 %v5916_v21 }
 0x286   :  { %4192 = vmatpush1.bf16.msra.mxu1 %v5911_v22 }
 0x287   :  { %4438 = vmatpush1.bf16.msra.mxu0 %v5914_v24  ;;  %4193 = vmatprep.subr.bf16.mxu1 %v5919_v25 }
 0x288   :  { %4439 = vmatprep.subr.bf16.mxu0 %v5922_v27 }
 0x28a   :  { %4194 = vmatpush1.bf16.msra.mxu1 %v5917_v28 }
 0x28b   :  { %4440 = vmatpush1.bf16.msra.mxu0 %v5920_v29  ;;  %4195 = vmatprep.subr.bf16.mxu1 %v5925_v33 }
 0x28c   :  { %4441 = vmatprep.subr.bf16.mxu0 %v5928_v32 }
 0x28e   :  { %4196 = vmatpush1.bf16.msra.mxu1 %v5923_v35 }
 0x28f   :  { %4442 = vmatpush1.bf16.msra.mxu0 %v5926_v36 }
 0x291   :  { %4214 = vmatmul.mubr.bf16.vlgmr.msra.gmra.mrb[24].mxu1 %v2204_v37 }
 0x292   :  { %4460 = vmatmul.mubr.bf16.vlgmr.msra.gmra.mrb[24].mxu0 %v2204_v37 }
 0x364   :  { %v4215_v45 = vpop.f32.mrb[24].mxu1 }
 0x365   :  { %v5087_v46 = vadd.f32 %v4215_v45, %v2121_v39  ;;  %v4461_v31 = vpop.f32.mrb[24].mxu0  ;;  %v4217_v47 = vpop.f32.mrb[25].mxu1 }
 0x366   :  { %v5089_v48 = vadd.f32 %v4461_v31, %v2129_v40  ;;  %v5088_v41 = vadd.f32 %v4217_v47, %v2125_v42  ;;  %v4463_v9 = vpop.f32.mrb[25].mxu0  ;;  %v4219_v51 = vpop.f32.mrb[26].mxu1 }
 0x367   :  { %v4468_v50 = vmul.f32 %v5087_v46, %v5087_v46  ;;  %v5090_v52 = vadd.f32 %v4463_v9, %v2133_v43  ;;  %v4465_v54 = vpop.f32.mrb[26].mxu0  ;;  %v4220_v0 = vpop.f32.mrb[27].mxu1 }
 0x368   :  { %v4470_v10 = vmul.f32 %v5089_v48, %v5089_v48  ;;  %v4469_v26 = vmul.f32 %v5088_v41, %v5088_v41  ;;  %v4466_v55 = vpop.f32.mrb[27].mxu0 }
 0x369   :  { %v4473_v1 = vsel %vm4472_vm1, %v4468_v50, 0.0  ;;  %v4471_v56 = vmul.f32 %v5090_v52, %v5090_v52 }
 0x36a   :  { %v4474_v30 = vsel %vm4472_vm1, %v4469_v26, 0.0  ;;  %v4476_v34 = vsel %vm4472_vm1, %v4470_v10, 0.0 }
 0x36b   :  { %v4475_v49 = vadd.f32 %v4474_v30, %v4473_v1  ;;  %v4478_v58 = vsel %vm4472_vm1, %v4471_v56, 0.0 }
 0x36d   :  { %v4477_v57 = vadd.f32 %v4476_v34, %v4475_v49 }
 0x36f   :  { %v4479_v61 = vadd.f32 %v4478_v58, %v4477_v57 }
 0x371   :  { %4480 = vadd.xlane.f32.xlu0 %v4479_v61 }
 0x3fe   :  { %v4481_v59 = vpop.xlane.xlu0 %4480 }
 0x3ff   :  { %v4482_v62 = vmax.f32 %v4481_v59, 1e-24 }
 0x401   :  { %5929 = vrsqrt.f32 %v4482_v62 }
 0x40b   :  { %v5930_v23 = vpop.eup %5929 }
 0x40c   :  { %v4484_v7 = vmul.f32 %v5930_v23, %v5087_v46  ;;  %v4485_v60 = vmul.f32 %v5930_v23, %v5088_v41  ;;  %v4486_v8 = vmul.f32 %v5930_v23, %v5089_v48  ;;  %v4487_v5 = vmul.f32 %v5930_v23, %v5090_v52 }
 0x40e   :  { %v4492_v53 = vcombine.low %v4484_v7, %v4485_v60  ;;  %v4493_v44 = vcombine.low %v4486_v8, %v4487_v5 }
 0x410   :  { %v4500_v11 = vrot.slane %v4492_v53, %v4499_v4  ;;  %v4507_v12 = vrot.slane %v4493_v44, %v4499_v4 }
 0x412   :  { %v4508_v13 = vcombine.low %v4500_v11, %v4507_v12 }
 0x414   :  { %4510 = vst [vmem:[#allocation8] sm:$0xff] %v4508_v13 }
 0x415   :  { %6011 = shalt.err (!%p6008_p0)
}
 0x416   :  { %s6012_s11 = scalar_lea.hbm %s6804_s5, 128 }
 0x417   :  { %p6013_p1 = scmp.ne.s32.totalorder %s6804_s5, %s6012_s11  ;;  %p6016_p2 = scmp.lt.u32.totalorder %s6012_s11, %s6804_s5 }
 0x419   :  { %p6018_p3 = pnand %p6016_p2, %p6013_p1 }
 0x41b   :  { %6021 = shalt.err (!%p6018_p3)
}
 0x41c   :  { %4520 = dma.vmem_to_hbm [thread:$0]  %s4518_s6, 128, %s6804_s5, [#allocation4]  }
 0x41d   :  { %6026 = dma.done.wait [#allocation4], 128  }
 0x41e   :  { %6027 = vsyncadd [#allocation4], 4294967168 }
 0x41f   :  { %4524 = vsyncpa [#allocation3], 1 }
 0x420   :  { %4525 = vsyncpa [#allocation6], 1 }
 0x421   :  { %4526 = vsyncpa [#allocation4], 1 }

</bundles_post_ra>
